<compile_context>
chip_gen: v7x
topology: tpu7x:2x2x1
jax: 0.10.0
libtpu: 0.0.40
codegen_flags: <defaults>
</compile_context>

<pallas_src>
import jax
import jax.numpy as jnp
from jax import lax
from jax.experimental import pallas as pl
from jax.experimental.pallas import tpu as pltpu

# ----- small synthetic model dims -----
N = 2          # number of prompts (batch)
L = 8          # context length (seq)
D = 32         # transformer width
H = 4          # heads
DH = D // H    # head dim
MLP = 4 * D    # mlp hidden
LAYERS = 2     # transformer depth
E = 16         # text embedding dim
EPS = 1e-5


def _layernorm(x, w, b):
    mu = jnp.mean(x, axis=-1, keepdims=True)
    var = jnp.mean((x - mu) ** 2, axis=-1, keepdims=True)
    return (x - mu) * lax.rsqrt(var + EPS) * w + b


# ---------------------------------------------------------------------------
# Fused kernel: one prompt per grid step, all layers + final LN(EOT) @ proj
# ---------------------------------------------------------------------------
def text_encoder_kernel(
        eot_ref,                        # SMEM (N,) int32 scalar-prefetch: EOT position
        x_ref,                          # (1, L, D) f32   prompt + positional embedding
        ln1w_ref, ln1b_ref,             # (LAYERS, 1, D) f32
        wqkv_ref, bqkv_ref,             # (LAYERS, D, 3D) bf16, (LAYERS, 1, 3D) f32
        wo_ref, bo_ref,                 # (LAYERS, D, D)  bf16, (LAYERS, 1, D)  f32
        ln2w_ref, ln2b_ref,             # (LAYERS, 1, D) f32
        wfc_ref, bfc_ref,               # (LAYERS, D, MLP) bf16, (LAYERS, 1, MLP) f32
        wpr_ref, bpr_ref,               # (LAYERS, MLP, D) bf16, (LAYERS, 1, D)  f32
        lnfw_ref, lnfb_ref,             # (1, D) f32
        proj_ref,                       # (D, E) bf16
        o_ref):                         # (1, 1, E) f32 output block
    x = x_ref[0]                        # (L, D) f32

    # In-kernel per-prompt causal additive bias (VPU iota/compare, no HBM array).
    row_ids = lax.broadcasted_iota(jnp.int32, (L, L), 0)
    col_ids = lax.broadcasted_iota(jnp.int32, (L, L), 1)
    causal_bias = jnp.where(col_ids <= row_ids, 0.0, -1e30).astype(jnp.float32)

    for li in range(LAYERS):            # static unroll; weights stay VMEM-resident
        # ---- multi-head causal self-attention ----
        h = _layernorm(x, ln1w_ref[li], ln1b_ref[li])                       # (L, D) f32
        # single lane-dense qkv projection (1/sqrt(DH) already folded into q weights)
        qkv = jnp.dot(h.astype(jnp.bfloat16), wqkv_ref[li],
                      preferred_element_type=jnp.float32) + bqkv_ref[li]    # (L, 3D)
        q = qkv[:, 0 * D:1 * D]
        k = qkv[:, 1 * D:2 * D]
        v = qkv[:, 2 * D:3 * D]
        # head split: static lane slices stacked along a leading batch axis
        qh = jnp.stack([q[:, hh * DH:(hh + 1) * DH] for hh in range(H)],
                       axis=0).astype(jnp.bfloat16)                          # (H, L, DH)
        kh = jnp.stack([k[:, hh * DH:(hh + 1) * DH] for hh in range(H)],
                       axis=0).astype(jnp.bfloat16)
        vh = jnp.stack([v[:, hh * DH:(hh + 1) * DH] for hh in range(H)],
                       axis=0).astype(jnp.bfloat16)
        s = lax.dot_general(qh, kh, (((2,), (2,)), ((0,), (0,))),
                            preferred_element_type=jnp.float32)              # (H, L, L)
        s = s + causal_bias[None]
        s = s - jnp.max(s, axis=-1, keepdims=True)
        p = jnp.exp(s)
        p = p / jnp.sum(p, axis=-1, keepdims=True)      # exact reciprocal (f32 softmax)
        o = lax.dot_general(p.astype(jnp.bfloat16), vh, (((2,), (1,)), ((0,), (0,))),
                            preferred_element_type=jnp.float32)              # (H, L, DH)
        o_flat = jnp.concatenate([o[hh] for hh in range(H)], axis=-1)        # (L, D)
        # single out-projection contracting over the full model dim (no head-sum)
        x = x + jnp.dot(o_flat.astype(jnp.bfloat16), wo_ref[li],
                        preferred_element_type=jnp.float32) + bo_ref[li]

        # ---- MLP (QuickGELU) ----
        h2 = _layernorm(x, ln2w_ref[li], ln2b_ref[li])
        m = jnp.dot(h2.astype(jnp.bfloat16), wfc_ref[li],
                    preferred_element_type=jnp.float32) + bfc_ref[li]
        m = m * jax.nn.sigmoid(1.702 * m)
        x = x + jnp.dot(m.astype(jnp.bfloat16), wpr_ref[li],
                        preferred_element_type=jnp.float32) + bpr_ref[li]

    # ---- EOT gather via one-hot matmul + final LN + text projection ----
    n = pl.program_id(0)
    eot = eot_ref[n]                                                         # SMEM scalar
    onehot = (lax.broadcasted_iota(jnp.int32, (1, L), 1) == eot).astype(jnp.float32)
    row = jnp.dot(onehot, x, preferred_element_type=jnp.float32)             # (1, D) exact
    row = _layernorm(row, lnfw_ref[...], lnfb_ref[...])
    o_ref[0] = jnp.dot(row.astype(jnp.bfloat16), proj_ref[...],
                       preferred_element_type=jnp.float32)                   # (1, E)


# ---------------------------------------------------------------------------
# Trace-time weight repacking: layer-stacked, bf16 matmul weights, scale folded
# ---------------------------------------------------------------------------
def pack_layer_params(layers):
    def stack(fn, dtype=jnp.float32):
        return jnp.stack([fn(lp) for lp in layers], axis=0).astype(dtype)

    scale = 1.0 / (DH ** 0.5)
    colscale = jnp.concatenate(
        [jnp.full((D,), scale, jnp.float32), jnp.ones((2 * D,), jnp.float32)])[None, :]

    ln1w = stack(lambda lp: lp["ln1w"])
    ln1b = stack(lambda lp: lp["ln1b"])
    wqkv = stack(lambda lp: lp["wqkv"] * colscale, jnp.bfloat16)   # (LAYERS, D, 3D)
    bqkv = stack(lambda lp: lp["bqkv"] * colscale)                 # (LAYERS, 1, 3D)
    wo   = stack(lambda lp: lp["wo"], jnp.bfloat16)                # (LAYERS, D, D)
    bo   = stack(lambda lp: lp["bo"])
    ln2w = stack(lambda lp: lp["ln2w"])
    ln2b = stack(lambda lp: lp["ln2b"])
    wfc  = stack(lambda lp: lp["wfc"], jnp.bfloat16)
    bfc  = stack(lambda lp: lp["bfc"])
    wpr  = stack(lambda lp: lp["wpr"], jnp.bfloat16)
    bpr  = stack(lambda lp: lp["bpr"])
    return (ln1w, ln1b, wqkv, bqkv, wo, bo, ln2w, ln2b, wfc, bfc, wpr, bpr)


# ---------------------------------------------------------------------------
# Full forward (single pallas_call, grid over prompts)
# ---------------------------------------------------------------------------
def text_encoder_forward(prompts, tokenized_prompts, params):
    eot = jnp.argmax(tokenized_prompts, axis=-1).astype(jnp.int32)          # (N,)
    # trivial elementwise positional add in plain XLA
    x0 = (prompts + params["pos"]).astype(jnp.float32)                      # (N, L, D)

    stk = pack_layer_params(params["layers"])
    lnfw = params["lnfw"].astype(jnp.float32)
    lnfb = params["lnfb"].astype(jnp.float32)
    proj = params["proj"].astype(jnp.bfloat16)

    def full_spec(arr):
        nd = arr.ndim
        return pl.BlockSpec(arr.shape, lambda n, eot_ref, _nd=nd: (0,) * _nd)

    in_specs = [pl.BlockSpec((1, L, D), lambda n, eot_ref: (n, 0, 0))]
    in_specs += [full_spec(a) for a in stk]
    in_specs += [full_spec(lnfw), full_spec(lnfb), full_spec(proj)]
    out_spec = pl.BlockSpec((1, 1, E), lambda n, eot_ref: (n, 0, 0))

    out = pl.pallas_call(
        text_encoder_kernel,
        out_shape=jax.ShapeDtypeStruct((N, 1, E), jnp.float32),
        grid_spec=pltpu.PrefetchScalarGridSpec(
            num_scalar_prefetch=1,
            grid=(N,),
            in_specs=in_specs,
            out_specs=out_spec,
        ),
        compiler_params=pltpu.CompilerParams(
            dimension_semantics=("parallel",)),
    )(eot, x0, *stk, lnfw, lnfb, proj)
    return out.reshape(N, E)


# ---------------------------------------------------------------------------
# Deterministic synthetic parameters (standard CLIP-style layouts)
# ---------------------------------------------------------------------------
def init_params(key):
    keys = jax.random.split(key, 2 + LAYERS)
    params = {
        "pos": 0.01 * jax.random.normal(keys[0], (L, D), jnp.float32),
        "lnfw": jnp.ones((1, D), jnp.float32),
        "lnfb": jnp.zeros((1, D), jnp.float32),
        "proj": 0.02 * jax.random.normal(keys[1], (D, E), jnp.float32),
        "layers": [],
    }
    for li in range(LAYERS):
        k = jax.random.split(keys[2 + li], 4)
        params["layers"].append({
            "ln1w": jnp.ones((1, D), jnp.float32),
            "ln1b": jnp.zeros((1, D), jnp.float32),
            "wqkv": 0.02 * jax.random.normal(k[0], (D, 3 * D), jnp.float32),
            "bqkv": jnp.zeros((1, 3 * D), jnp.float32),
            "wo": 0.02 * jax.random.normal(k[1], (D, D), jnp.float32),
            "bo": jnp.zeros((1, D), jnp.float32),
            "ln2w": jnp.ones((1, D), jnp.float32),
            "ln2b": jnp.zeros((1, D), jnp.float32),
            "wfc": 0.02 * jax.random.normal(k[2], (D, MLP), jnp.float32),
            "bfc": jnp.zeros((1, MLP), jnp.float32),
            "wpr": 0.02 * jax.random.normal(k[3], (MLP, D), jnp.float32),
            "bpr": jnp.zeros((1, D), jnp.float32),
        })
    return params


# ---------------------------------------------------------------------------
# Pure-JAX f32 reference (standard per-head layout) for correctness check
# ---------------------------------------------------------------------------
def _ref_ln(v, w, b):
    mu = v.mean(-1, keepdims=True)
    var = ((v - mu) ** 2).mean(-1, keepdims=True)
    return (v - mu) / jnp.sqrt(var + EPS) * w + b


def _ref_block(x, lp):
    h = _ref_ln(x, lp["ln1w"][0], lp["ln1b"][0])
    qkv = h @ lp["wqkv"] + lp["bqkv"][0]
    q, k, v = jnp.split(qkv, 3, axis=-1)
    q = q.reshape(N, L, H, DH)
    k = k.reshape(N, L, H, DH)
    v = v.reshape(N, L, H, DH)
    s = jnp.einsum("nlhd,nmhd->nhlm", q, k) / jnp.sqrt(DH)
    causal = jnp.tril(jnp.ones((L, L), bool))
    s = jnp.where(causal, s, -1e30)
    p = jax.nn.softmax(s, axis=-1)
    o = jnp.einsum("nhlm,nmhd->nlhd", p, v).reshape(N, L, D)
    x = x + (o @ lp["wo"] + lp["bo"][0])
    h = _ref_ln(x, lp["ln2w"][0], lp["ln2b"][0])
    h = h @ lp["wfc"] + lp["bfc"][0]
    h = h * jax.nn.sigmoid(1.702 * h)
    return x + (h @ lp["wpr"] + lp["bpr"][0])


def ref_forward(prompts, tokenized, params):
    x = prompts + params["pos"]
    for lp in params["layers"]:
        x = _ref_block(x, lp)
    x = _ref_ln(x, params["lnfw"][0], params["lnfb"][0])
    eot = jnp.argmax(tokenized, axis=-1)
    return x[jnp.arange(N), eot] @ params["proj"]


if __name__ == "__main__":
    key = jax.random.PRNGKey(0)
    kp, kt, kw = jax.random.split(key, 3)
    prompts = 0.02 * jax.random.normal(kp, (N, L, D), jnp.float32)
    tokenized_prompts = jax.random.randint(kt, (N, L), 0, 1000).astype(jnp.int32)
    params = init_params(kw)

    out = text_encoder_forward(prompts, tokenized_prompts, params)
    out = jax.block_until_ready(out)

    ref = ref_forward(prompts, tokenized_prompts, params)
    assert out.shape == (N, E), out.shape
    # tolerance accounts for bf16 matmul inputs (f32 accumulation) vs the f32 reference
    assert jnp.allclose(out, ref, atol=2e-2, rtol=2e-2), (out, ref)
    print("KERNEL_OK")
</pallas_src>

<mosaic_0001>
module attributes {stable_mosaic.version = 11 : i64} {
  func.func @text_encoder_kernel(%arg0: i32, %arg1: memref<2xi32, #tpu.memory_space<smem>>, %arg2: memref<1x8x32xf32, #tpu.memory_space<vmem>>, %arg3: memref<2x1x32xf32, #tpu.memory_space<vmem>>, %arg4: memref<2x1x32xf32, #tpu.memory_space<vmem>>, %arg5: memref<2x32x96xbf16, #tpu.memory_space<vmem>>, %arg6: memref<2x1x96xf32, #tpu.memory_space<vmem>>, %arg7: memref<2x32x32xbf16, #tpu.memory_space<vmem>>, %arg8: memref<2x1x32xf32, #tpu.memory_space<vmem>>, %arg9: memref<2x1x32xf32, #tpu.memory_space<vmem>>, %arg10: memref<2x1x32xf32, #tpu.memory_space<vmem>>, %arg11: memref<2x32x128xbf16, #tpu.memory_space<vmem>>, %arg12: memref<2x1x128xf32, #tpu.memory_space<vmem>>, %arg13: memref<2x128x32xbf16, #tpu.memory_space<vmem>>, %arg14: memref<2x1x32xf32, #tpu.memory_space<vmem>>, %arg15: memref<1x32xf32, #tpu.memory_space<vmem>>, %arg16: memref<1x32xf32, #tpu.memory_space<vmem>>, %arg17: memref<32x16xbf16, #tpu.memory_space<vmem>>, %arg18: memref<1x1x16xf32, #tpu.memory_space<vmem>>) attributes {dimension_semantics = [#tpu.dimension_semantics<parallel>], iteration_bounds = array<i64: 2>, scalar_prefetch = 1 : i64, scratch_operands = 0 : i64, tpu.core_type = #tpu.core_type<tc>, window_params = [{transform_indices = @transform_0, window_bounds = array<i64: 1, 8, 32>}, {pipeline_mode = #tpu.pipeline_mode<synchronous>, transform_indices = @transform_1, window_bounds = array<i64: 2, 1, 32>}, {pipeline_mode = #tpu.pipeline_mode<synchronous>, transform_indices = @transform_2, window_bounds = array<i64: 2, 1, 32>}, {pipeline_mode = #tpu.pipeline_mode<synchronous>, transform_indices = @transform_3, window_bounds = array<i64: 2, 32, 96>}, {pipeline_mode = #tpu.pipeline_mode<synchronous>, transform_indices = @transform_4, window_bounds = array<i64: 2, 1, 96>}, {pipeline_mode = #tpu.pipeline_mode<synchronous>, transform_indices = @transform_5, window_bounds = array<i64: 2, 32, 32>}, {pipeline_mode = #tpu.pipeline_mode<synchronous>, transform_indices = @transform_6, window_bounds = array<i64: 2, 1, 32>}, {pipeline_mode = #tpu.pipeline_mode<synchronous>, transform_indices = @transform_7, window_bounds = array<i64: 2, 1, 32>}, {pipeline_mode = #tpu.pipeline_mode<synchronous>, transform_indices = @transform_8, window_bounds = array<i64: 2, 1, 32>}, {pipeline_mode = #tpu.pipeline_mode<synchronous>, transform_indices = @transform_9, window_bounds = array<i64: 2, 32, 128>}, {pipeline_mode = #tpu.pipeline_mode<synchronous>, transform_indices = @transform_10, window_bounds = array<i64: 2, 1, 128>}, {pipeline_mode = #tpu.pipeline_mode<synchronous>, transform_indices = @transform_11, window_bounds = array<i64: 2, 128, 32>}, {pipeline_mode = #tpu.pipeline_mode<synchronous>, transform_indices = @transform_12, window_bounds = array<i64: 2, 1, 32>}, {pipeline_mode = #tpu.pipeline_mode<synchronous>, transform_indices = @transform_13, window_bounds = array<i64: 1, 32>}, {pipeline_mode = #tpu.pipeline_mode<synchronous>, transform_indices = @transform_14, window_bounds = array<i64: 1, 32>}, {pipeline_mode = #tpu.pipeline_mode<synchronous>, transform_indices = @transform_15, window_bounds = array<i64: 32, 16>}, {transform_indices = @transform_16, window_bounds = array<i64: 1, 1, 16>}]} {
    %c0 = arith.constant 0 : index
    %c0_0 = arith.constant 0 : index
    %c0_1 = arith.constant 0 : index
    %0 = vector.load %arg2[%c0, %c0_0, %c0_1] : memref<1x8x32xf32, #tpu.memory_space<vmem>>, vector<1x8x32xf32>
    %1 = vector.shape_cast %0 : vector<1x8x32xf32> to vector<8x32xf32>
    %2 = tpu.iota {dimensions = array<i32: 0>} : vector<8x8xi32>
    %3 = tpu.iota {dimensions = array<i32: 1>} : vector<8x8xi32>
    %4 = arith.cmpi sle, %3, %2 : vector<8x8xi32>
    %cst = arith.constant 0.000000e+00 : f32
    %cst_2 = arith.constant -1.000000e+30 : f32
    %5 = vector.broadcast %cst : f32 to vector<8x8xf32>
    %6 = vector.broadcast %cst_2 : f32 to vector<8x8xf32>
    %7 = arith.select %4, %5, %6 : vector<8x8xi1>, vector<8x8xf32>
    %c0_3 = arith.constant 0 : index
    %c0_4 = arith.constant 0 : index
    %c0_5 = arith.constant 0 : index
    %8 = vector.load %arg3[%c0_3, %c0_4, %c0_5] : memref<2x1x32xf32, #tpu.memory_space<vmem>>, vector<1x1x32xf32>
    %9 = vector.shape_cast %8 : vector<1x1x32xf32> to vector<1x32xf32>
    %c0_6 = arith.constant 0 : index
    %c0_7 = arith.constant 0 : index
    %c0_8 = arith.constant 0 : index
    %10 = vector.load %arg4[%c0_6, %c0_7, %c0_8] : memref<2x1x32xf32, #tpu.memory_space<vmem>>, vector<1x1x32xf32>
    %11 = vector.shape_cast %10 : vector<1x1x32xf32> to vector<1x32xf32>
    %cst_9 = arith.constant dense<0.000000e+00> : vector<8xf32>
    %12 = vector.multi_reduction <add>, %1, %cst_9 [1] : vector<8x32xf32> to vector<8xf32>
    %13 = vector.shape_cast %12 : vector<8xf32> to vector<8x1xf32>
    %cst_10 = arith.constant 3.200000e+01 : f32
    %14 = vector.broadcast %cst_10 : f32 to vector<8x1xf32>
    %15 = arith.divf %13, %14 : vector<8x1xf32>
    %16 = vector.broadcast %15 : vector<8x1xf32> to vector<8x32xf32>
    %17 = arith.subf %1, %16 : vector<8x32xf32>
    %18 = arith.mulf %17, %17 : vector<8x32xf32>
    %cst_11 = arith.constant dense<0.000000e+00> : vector<8xf32>
    %19 = vector.multi_reduction <add>, %18, %cst_11 [1] : vector<8x32xf32> to vector<8xf32>
    %20 = vector.shape_cast %19 : vector<8xf32> to vector<8x1xf32>
    %cst_12 = arith.constant 3.200000e+01 : f32
    %21 = vector.broadcast %cst_12 : f32 to vector<8x1xf32>
    %22 = arith.divf %20, %21 : vector<8x1xf32>
    %23 = vector.broadcast %15 : vector<8x1xf32> to vector<8x32xf32>
    %24 = arith.subf %1, %23 : vector<8x32xf32>
    %cst_13 = arith.constant 9.99999974E-6 : f32
    %25 = vector.broadcast %cst_13 : f32 to vector<8x1xf32>
    %26 = arith.addf %22, %25 : vector<8x1xf32>
    %27 = math.rsqrt %26 : vector<8x1xf32>
    %28 = vector.broadcast %27 : vector<8x1xf32> to vector<8x32xf32>
    %29 = arith.mulf %24, %28 : vector<8x32xf32>
    %30 = vector.broadcast %9 : vector<1x32xf32> to vector<8x32xf32>
    %31 = arith.mulf %29, %30 : vector<8x32xf32>
    %32 = vector.broadcast %11 : vector<1x32xf32> to vector<8x32xf32>
    %33 = arith.addf %31, %32 : vector<8x32xf32>
    %34 = arith.truncf %33 : vector<8x32xf32> to vector<8x32xbf16>
    %c0_14 = arith.constant 0 : index
    %c0_15 = arith.constant 0 : index
    %c0_16 = arith.constant 0 : index
    %35 = vector.load %arg5[%c0_14, %c0_15, %c0_16] : memref<2x32x96xbf16, #tpu.memory_space<vmem>>, vector<1x32x96xbf16>
    %36 = vector.shape_cast %35 : vector<1x32x96xbf16> to vector<32x96xbf16>
    %cst_17 = arith.constant dense<0.000000e+00> : vector<8x96xf32>
    %37 = tpu.matmul %34, %36, %cst_17 {dimension_numbers = #tpu.dot_dimension_numbers<[1], [0], [0], [1], [0, 0, 1, 1], [], []>} : vector<8x32xbf16>, vector<32x96xbf16>, vector<8x96xf32> -> vector<8x96xf32>
    %c0_18 = arith.constant 0 : index
    %c0_19 = arith.constant 0 : index
    %c0_20 = arith.constant 0 : index
    %38 = vector.load %arg6[%c0_18, %c0_19, %c0_20] : memref<2x1x96xf32, #tpu.memory_space<vmem>>, vector<1x1x96xf32>
    %39 = vector.shape_cast %38 : vector<1x1x96xf32> to vector<1x96xf32>
    %40 = vector.broadcast %39 : vector<1x96xf32> to vector<8x96xf32>
    %41 = arith.addf %37, %40 : vector<8x96xf32>
    %42 = vector.extract_strided_slice %41 {offsets = [0, 0], sizes = [8, 32], strides = [1, 1]} : vector<8x96xf32> to vector<8x32xf32>
    %43 = vector.extract_strided_slice %41 {offsets = [0, 32], sizes = [8, 32], strides = [1, 1]} : vector<8x96xf32> to vector<8x32xf32>
    %44 = vector.extract_strided_slice %41 {offsets = [0, 64], sizes = [8, 32], strides = [1, 1]} : vector<8x96xf32> to vector<8x32xf32>
    %45 = vector.extract_strided_slice %42 {offsets = [0, 0], sizes = [8, 8], strides = [1, 1]} : vector<8x32xf32> to vector<8x8xf32>
    %46 = vector.extract_strided_slice %42 {offsets = [0, 8], sizes = [8, 8], strides = [1, 1]} : vector<8x32xf32> to vector<8x8xf32>
    %47 = vector.extract_strided_slice %42 {offsets = [0, 16], sizes = [8, 8], strides = [1, 1]} : vector<8x32xf32> to vector<8x8xf32>
    %48 = vector.extract_strided_slice %42 {offsets = [0, 24], sizes = [8, 8], strides = [1, 1]} : vector<8x32xf32> to vector<8x8xf32>
    %49 = vector.shape_cast %45 : vector<8x8xf32> to vector<1x8x8xf32>
    %50 = vector.shape_cast %46 : vector<8x8xf32> to vector<1x8x8xf32>
    %51 = vector.shape_cast %47 : vector<8x8xf32> to vector<1x8x8xf32>
    %52 = vector.shape_cast %48 : vector<8x8xf32> to vector<1x8x8xf32>
    %53 = tpu.concatenate %49, %50, %51, %52 in 0 : vector<1x8x8xf32>, vector<1x8x8xf32>, vector<1x8x8xf32>, vector<1x8x8xf32> -> vector<4x8x8xf32>
    %54 = arith.truncf %53 : vector<4x8x8xf32> to vector<4x8x8xbf16>
    %55 = vector.extract_strided_slice %43 {offsets = [0, 0], sizes = [8, 8], strides = [1, 1]} : vector<8x32xf32> to vector<8x8xf32>
    %56 = vector.extract_strided_slice %43 {offsets = [0, 8], sizes = [8, 8], strides = [1, 1]} : vector<8x32xf32> to vector<8x8xf32>
    %57 = vector.extract_strided_slice %43 {offsets = [0, 16], sizes = [8, 8], strides = [1, 1]} : vector<8x32xf32> to vector<8x8xf32>
    %58 = vector.extract_strided_slice %43 {offsets = [0, 24], sizes = [8, 8], strides = [1, 1]} : vector<8x32xf32> to vector<8x8xf32>
    %59 = vector.shape_cast %55 : vector<8x8xf32> to vector<1x8x8xf32>
    %60 = vector.shape_cast %56 : vector<8x8xf32> to vector<1x8x8xf32>
    %61 = vector.shape_cast %57 : vector<8x8xf32> to vector<1x8x8xf32>
    %62 = vector.shape_cast %58 : vector<8x8xf32> to vector<1x8x8xf32>
    %63 = tpu.concatenate %59, %60, %61, %62 in 0 : vector<1x8x8xf32>, vector<1x8x8xf32>, vector<1x8x8xf32>, vector<1x8x8xf32> -> vector<4x8x8xf32>
    %64 = arith.truncf %63 : vector<4x8x8xf32> to vector<4x8x8xbf16>
    %65 = vector.extract_strided_slice %44 {offsets = [0, 0], sizes = [8, 8], strides = [1, 1]} : vector<8x32xf32> to vector<8x8xf32>
    %66 = vector.extract_strided_slice %44 {offsets = [0, 8], sizes = [8, 8], strides = [1, 1]} : vector<8x32xf32> to vector<8x8xf32>
    %67 = vector.extract_strided_slice %44 {offsets = [0, 16], sizes = [8, 8], strides = [1, 1]} : vector<8x32xf32> to vector<8x8xf32>
    %68 = vector.extract_strided_slice %44 {offsets = [0, 24], sizes = [8, 8], strides = [1, 1]} : vector<8x32xf32> to vector<8x8xf32>
    %69 = vector.shape_cast %65 : vector<8x8xf32> to vector<1x8x8xf32>
    %70 = vector.shape_cast %66 : vector<8x8xf32> to vector<1x8x8xf32>
    %71 = vector.shape_cast %67 : vector<8x8xf32> to vector<1x8x8xf32>
    %72 = vector.shape_cast %68 : vector<8x8xf32> to vector<1x8x8xf32>
    %73 = tpu.concatenate %69, %70, %71, %72 in 0 : vector<1x8x8xf32>, vector<1x8x8xf32>, vector<1x8x8xf32>, vector<1x8x8xf32> -> vector<4x8x8xf32>
    %74 = arith.truncf %73 : vector<4x8x8xf32> to vector<4x8x8xbf16>
    %cst_21 = arith.constant dense<0.000000e+00> : vector<4x8x8xf32>
    %75 = tpu.matmul %54, %64, %cst_21 {dimension_numbers = #tpu.dot_dimension_numbers<[2], [2], [1], [1], [0, 0, 0, 1, 1, 1], [0], [0]>} : vector<4x8x8xbf16>, vector<4x8x8xbf16>, vector<4x8x8xf32> -> vector<4x8x8xf32>
    %76 = vector.shape_cast %7 : vector<8x8xf32> to vector<1x8x8xf32>
    %77 = vector.broadcast %76 : vector<1x8x8xf32> to vector<4x8x8xf32>
    %78 = arith.addf %75, %77 : vector<4x8x8xf32>
    %cst_22 = arith.constant dense<0xFF800000> : vector<4x8xf32>
    %79 = vector.multi_reduction <maximumf>, %78, %cst_22 [2] : vector<4x8x8xf32> to vector<4x8xf32>
    %80 = vector.shape_cast %79 : vector<4x8xf32> to vector<4x8x1xf32>
    %81 = vector.broadcast %80 : vector<4x8x1xf32> to vector<4x8x8xf32>
    %82 = arith.subf %78, %81 : vector<4x8x8xf32>
    %83 = math.exp %82 : vector<4x8x8xf32>
    %cst_23 = arith.constant dense<0.000000e+00> : vector<4x8xf32>
    %84 = vector.multi_reduction <add>, %83, %cst_23 [2] : vector<4x8x8xf32> to vector<4x8xf32>
    %85 = vector.shape_cast %84 : vector<4x8xf32> to vector<4x8x1xf32>
    %86 = vector.broadcast %85 : vector<4x8x1xf32> to vector<4x8x8xf32>
    %87 = arith.divf %83, %86 : vector<4x8x8xf32>
    %88 = arith.truncf %87 : vector<4x8x8xf32> to vector<4x8x8xbf16>
    %cst_24 = arith.constant dense<0.000000e+00> : vector<4x8x8xf32>
    %89 = tpu.matmul %88, %74, %cst_24 {dimension_numbers = #tpu.dot_dimension_numbers<[2], [1], [1], [2], [0, 0, 0, 1, 1, 2], [0], [0]>} : vector<4x8x8xbf16>, vector<4x8x8xbf16>, vector<4x8x8xf32> -> vector<4x8x8xf32>
    %90 = vector.extract_strided_slice %89 {offsets = [0, 0, 0], sizes = [1, 8, 8], strides = [1, 1, 1]} : vector<4x8x8xf32> to vector<1x8x8xf32>
    %91 = vector.shape_cast %90 : vector<1x8x8xf32> to vector<8x8xf32>
    %92 = vector.extract_strided_slice %89 {offsets = [1, 0, 0], sizes = [1, 8, 8], strides = [1, 1, 1]} : vector<4x8x8xf32> to vector<1x8x8xf32>
    %93 = vector.shape_cast %92 : vector<1x8x8xf32> to vector<8x8xf32>
    %94 = vector.extract_strided_slice %89 {offsets = [2, 0, 0], sizes = [1, 8, 8], strides = [1, 1, 1]} : vector<4x8x8xf32> to vector<1x8x8xf32>
    %95 = vector.shape_cast %94 : vector<1x8x8xf32> to vector<8x8xf32>
    %96 = vector.extract_strided_slice %89 {offsets = [3, 0, 0], sizes = [1, 8, 8], strides = [1, 1, 1]} : vector<4x8x8xf32> to vector<1x8x8xf32>
    %97 = vector.shape_cast %96 : vector<1x8x8xf32> to vector<8x8xf32>
    %98 = tpu.concatenate %91, %93, %95, %97 in 1 : vector<8x8xf32>, vector<8x8xf32>, vector<8x8xf32>, vector<8x8xf32> -> vector<8x32xf32>
    %99 = arith.truncf %98 : vector<8x32xf32> to vector<8x32xbf16>
    %c0_25 = arith.constant 0 : index
    %c0_26 = arith.constant 0 : index
    %c0_27 = arith.constant 0 : index
    %100 = vector.load %arg7[%c0_25, %c0_26, %c0_27] : memref<2x32x32xbf16, #tpu.memory_space<vmem>>, vector<1x32x32xbf16>
    %101 = vector.shape_cast %100 : vector<1x32x32xbf16> to vector<32x32xbf16>
    %cst_28 = arith.constant dense<0.000000e+00> : vector<8x32xf32>
    %102 = tpu.matmul %99, %101, %cst_28 {dimension_numbers = #tpu.dot_dimension_numbers<[1], [0], [0], [1], [0, 0, 1, 1], [], []>} : vector<8x32xbf16>, vector<32x32xbf16>, vector<8x32xf32> -> vector<8x32xf32>
    %103 = arith.addf %1, %102 : vector<8x32xf32>
    %c0_29 = arith.constant 0 : index
    %c0_30 = arith.constant 0 : index
    %c0_31 = arith.constant 0 : index
    %104 = vector.load %arg8[%c0_29, %c0_30, %c0_31] : memref<2x1x32xf32, #tpu.memory_space<vmem>>, vector<1x1x32xf32>
    %105 = vector.shape_cast %104 : vector<1x1x32xf32> to vector<1x32xf32>
    %106 = vector.broadcast %105 : vector<1x32xf32> to vector<8x32xf32>
    %107 = arith.addf %103, %106 : vector<8x32xf32>
    %c0_32 = arith.constant 0 : index
    %c0_33 = arith.constant 0 : index
    %c0_34 = arith.constant 0 : index
    %108 = vector.load %arg9[%c0_32, %c0_33, %c0_34] : memref<2x1x32xf32, #tpu.memory_space<vmem>>, vector<1x1x32xf32>
    %109 = vector.shape_cast %108 : vector<1x1x32xf32> to vector<1x32xf32>
    %c0_35 = arith.constant 0 : index
    %c0_36 = arith.constant 0 : index
    %c0_37 = arith.constant 0 : index
    %110 = vector.load %arg10[%c0_35, %c0_36, %c0_37] : memref<2x1x32xf32, #tpu.memory_space<vmem>>, vector<1x1x32xf32>
    %111 = vector.shape_cast %110 : vector<1x1x32xf32> to vector<1x32xf32>
    %cst_38 = arith.constant dense<0.000000e+00> : vector<8xf32>
    %112 = vector.multi_reduction <add>, %107, %cst_38 [1] : vector<8x32xf32> to vector<8xf32>
    %113 = vector.shape_cast %112 : vector<8xf32> to vector<8x1xf32>
    %cst_39 = arith.constant 3.200000e+01 : f32
    %114 = vector.broadcast %cst_39 : f32 to vector<8x1xf32>
    %115 = arith.divf %113, %114 : vector<8x1xf32>
    %116 = vector.broadcast %115 : vector<8x1xf32> to vector<8x32xf32>
    %117 = arith.subf %107, %116 : vector<8x32xf32>
    %118 = arith.mulf %117, %117 : vector<8x32xf32>
    %cst_40 = arith.constant dense<0.000000e+00> : vector<8xf32>
    %119 = vector.multi_reduction <add>, %118, %cst_40 [1] : vector<8x32xf32> to vector<8xf32>
    %120 = vector.shape_cast %119 : vector<8xf32> to vector<8x1xf32>
    %cst_41 = arith.constant 3.200000e+01 : f32
    %121 = vector.broadcast %cst_41 : f32 to vector<8x1xf32>
    %122 = arith.divf %120, %121 : vector<8x1xf32>
    %123 = vector.broadcast %115 : vector<8x1xf32> to vector<8x32xf32>
    %124 = arith.subf %107, %123 : vector<8x32xf32>
    %cst_42 = arith.constant 9.99999974E-6 : f32
    %125 = vector.broadcast %cst_42 : f32 to vector<8x1xf32>
    %126 = arith.addf %122, %125 : vector<8x1xf32>
    %127 = math.rsqrt %126 : vector<8x1xf32>
    %128 = vector.broadcast %127 : vector<8x1xf32> to vector<8x32xf32>
    %129 = arith.mulf %124, %128 : vector<8x32xf32>
    %130 = vector.broadcast %109 : vector<1x32xf32> to vector<8x32xf32>
    %131 = arith.mulf %129, %130 : vector<8x32xf32>
    %132 = vector.broadcast %111 : vector<1x32xf32> to vector<8x32xf32>
    %133 = arith.addf %131, %132 : vector<8x32xf32>
    %134 = arith.truncf %133 : vector<8x32xf32> to vector<8x32xbf16>
    %c0_43 = arith.constant 0 : index
    %c0_44 = arith.constant 0 : index
    %c0_45 = arith.constant 0 : index
    %135 = vector.load %arg11[%c0_43, %c0_44, %c0_45] : memref<2x32x128xbf16, #tpu.memory_space<vmem>>, vector<1x32x128xbf16>
    %136 = vector.shape_cast %135 : vector<1x32x128xbf16> to vector<32x128xbf16>
    %cst_46 = arith.constant dense<0.000000e+00> : vector<8x128xf32>
    %137 = tpu.matmul %134, %136, %cst_46 {dimension_numbers = #tpu.dot_dimension_numbers<[1], [0], [0], [1], [0, 0, 1, 1], [], []>} : vector<8x32xbf16>, vector<32x128xbf16>, vector<8x128xf32> -> vector<8x128xf32>
    %c0_47 = arith.constant 0 : index
    %c0_48 = arith.constant 0 : index
    %c0_49 = arith.constant 0 : index
    %138 = vector.load %arg12[%c0_47, %c0_48, %c0_49] : memref<2x1x128xf32, #tpu.memory_space<vmem>>, vector<1x1x128xf32>
    %139 = vector.shape_cast %138 : vector<1x1x128xf32> to vector<1x128xf32>
    %140 = vector.broadcast %139 : vector<1x128xf32> to vector<8x128xf32>
    %141 = arith.addf %137, %140 : vector<8x128xf32>
    %cst_50 = arith.constant 1.702000e+00 : f32
    %142 = vector.broadcast %cst_50 : f32 to vector<8x128xf32>
    %143 = arith.mulf %142, %141 : vector<8x128xf32>
    %144 = arith.negf %143 : vector<8x128xf32>
    %145 = math.exp %144 : vector<8x128xf32>
    %cst_51 = arith.constant 1.000000e+00 : f32
    %146 = vector.broadcast %cst_51 : f32 to vector<8x128xf32>
    %147 = arith.addf %146, %145 : vector<8x128xf32>
    %148 = arith.divf %146, %147 : vector<8x128xf32>
    %149 = arith.mulf %141, %148 : vector<8x128xf32>
    %150 = arith.truncf %149 : vector<8x128xf32> to vector<8x128xbf16>
    %c0_52 = arith.constant 0 : index
    %c0_53 = arith.constant 0 : index
    %c0_54 = arith.constant 0 : index
    %151 = vector.load %arg13[%c0_52, %c0_53, %c0_54] : memref<2x128x32xbf16, #tpu.memory_space<vmem>>, vector<1x128x32xbf16>
    %152 = vector.shape_cast %151 : vector<1x128x32xbf16> to vector<128x32xbf16>
    %cst_55 = arith.constant dense<0.000000e+00> : vector<8x32xf32>
    %153 = tpu.matmul %150, %152, %cst_55 {dimension_numbers = #tpu.dot_dimension_numbers<[1], [0], [0], [1], [0, 0, 1, 1], [], []>} : vector<8x128xbf16>, vector<128x32xbf16>, vector<8x32xf32> -> vector<8x32xf32>
    %154 = arith.addf %107, %153 : vector<8x32xf32>
    %c0_56 = arith.constant 0 : index
    %c0_57 = arith.constant 0 : index
    %c0_58 = arith.constant 0 : index
    %155 = vector.load %arg14[%c0_56, %c0_57, %c0_58] : memref<2x1x32xf32, #tpu.memory_space<vmem>>, vector<1x1x32xf32>
    %156 = vector.shape_cast %155 : vector<1x1x32xf32> to vector<1x32xf32>
    %157 = vector.broadcast %156 : vector<1x32xf32> to vector<8x32xf32>
    %158 = arith.addf %154, %157 : vector<8x32xf32>
    %c1 = arith.constant 1 : index
    %c0_59 = arith.constant 0 : index
    %c0_60 = arith.constant 0 : index
    %159 = vector.load %arg3[%c1, %c0_59, %c0_60] : memref<2x1x32xf32, #tpu.memory_space<vmem>>, vector<1x1x32xf32>
    %160 = vector.shape_cast %159 : vector<1x1x32xf32> to vector<1x32xf32>
    %c1_61 = arith.constant 1 : index
    %c0_62 = arith.constant 0 : index
    %c0_63 = arith.constant 0 : index
    %161 = vector.load %arg4[%c1_61, %c0_62, %c0_63] : memref<2x1x32xf32, #tpu.memory_space<vmem>>, vector<1x1x32xf32>
    %162 = vector.shape_cast %161 : vector<1x1x32xf32> to vector<1x32xf32>
    %cst_64 = arith.constant dense<0.000000e+00> : vector<8xf32>
    %163 = vector.multi_reduction <add>, %158, %cst_64 [1] : vector<8x32xf32> to vector<8xf32>
    %164 = vector.shape_cast %163 : vector<8xf32> to vector<8x1xf32>
    %cst_65 = arith.constant 3.200000e+01 : f32
    %165 = vector.broadcast %cst_65 : f32 to vector<8x1xf32>
    %166 = arith.divf %164, %165 : vector<8x1xf32>
    %167 = vector.broadcast %166 : vector<8x1xf32> to vector<8x32xf32>
    %168 = arith.subf %158, %167 : vector<8x32xf32>
    %169 = arith.mulf %168, %168 : vector<8x32xf32>
    %cst_66 = arith.constant dense<0.000000e+00> : vector<8xf32>
    %170 = vector.multi_reduction <add>, %169, %cst_66 [1] : vector<8x32xf32> to vector<8xf32>
    %171 = vector.shape_cast %170 : vector<8xf32> to vector<8x1xf32>
    %cst_67 = arith.constant 3.200000e+01 : f32
    %172 = vector.broadcast %cst_67 : f32 to vector<8x1xf32>
    %173 = arith.divf %171, %172 : vector<8x1xf32>
    %174 = vector.broadcast %166 : vector<8x1xf32> to vector<8x32xf32>
    %175 = arith.subf %158, %174 : vector<8x32xf32>
    %cst_68 = arith.constant 9.99999974E-6 : f32
    %176 = vector.broadcast %cst_68 : f32 to vector<8x1xf32>
    %177 = arith.addf %173, %176 : vector<8x1xf32>
    %178 = math.rsqrt %177 : vector<8x1xf32>
    %179 = vector.broadcast %178 : vector<8x1xf32> to vector<8x32xf32>
    %180 = arith.mulf %175, %179 : vector<8x32xf32>
    %181 = vector.broadcast %160 : vector<1x32xf32> to vector<8x32xf32>
    %182 = arith.mulf %180, %181 : vector<8x32xf32>
    %183 = vector.broadcast %162 : vector<1x32xf32> to vector<8x32xf32>
    %184 = arith.addf %182, %183 : vector<8x32xf32>
    %185 = arith.truncf %184 : vector<8x32xf32> to vector<8x32xbf16>
    %c1_69 = arith.constant 1 : index
    %c0_70 = arith.constant 0 : index
    %c0_71 = arith.constant 0 : index
    %186 = vector.load %arg5[%c1_69, %c0_70, %c0_71] : memref<2x32x96xbf16, #tpu.memory_space<vmem>>, vector<1x32x96xbf16>
    %187 = vector.shape_cast %186 : vector<1x32x96xbf16> to vector<32x96xbf16>
    %cst_72 = arith.constant dense<0.000000e+00> : vector<8x96xf32>
    %188 = tpu.matmul %185, %187, %cst_72 {dimension_numbers = #tpu.dot_dimension_numbers<[1], [0], [0], [1], [0, 0, 1, 1], [], []>} : vector<8x32xbf16>, vector<32x96xbf16>, vector<8x96xf32> -> vector<8x96xf32>
    %c1_73 = arith.constant 1 : index
    %c0_74 = arith.constant 0 : index
    %c0_75 = arith.constant 0 : index
    %189 = vector.load %arg6[%c1_73, %c0_74, %c0_75] : memref<2x1x96xf32, #tpu.memory_space<vmem>>, vector<1x1x96xf32>
    %190 = vector.shape_cast %189 : vector<1x1x96xf32> to vector<1x96xf32>
    %191 = vector.broadcast %190 : vector<1x96xf32> to vector<8x96xf32>
    %192 = arith.addf %188, %191 : vector<8x96xf32>
    %193 = vector.extract_strided_slice %192 {offsets = [0, 0], sizes = [8, 32], strides = [1, 1]} : vector<8x96xf32> to vector<8x32xf32>
    %194 = vector.extract_strided_slice %192 {offsets = [0, 32], sizes = [8, 32], strides = [1, 1]} : vector<8x96xf32> to vector<8x32xf32>
    %195 = vector.extract_strided_slice %192 {offsets = [0, 64], sizes = [8, 32], strides = [1, 1]} : vector<8x96xf32> to vector<8x32xf32>
    %196 = vector.extract_strided_slice %193 {offsets = [0, 0], sizes = [8, 8], strides = [1, 1]} : vector<8x32xf32> to vector<8x8xf32>
    %197 = vector.extract_strided_slice %193 {offsets = [0, 8], sizes = [8, 8], strides = [1, 1]} : vector<8x32xf32> to vector<8x8xf32>
    %198 = vector.extract_strided_slice %193 {offsets = [0, 16], sizes = [8, 8], strides = [1, 1]} : vector<8x32xf32> to vector<8x8xf32>
    %199 = vector.extract_strided_slice %193 {offsets = [0, 24], sizes = [8, 8], strides = [1, 1]} : vector<8x32xf32> to vector<8x8xf32>
    %200 = vector.shape_cast %196 : vector<8x8xf32> to vector<1x8x8xf32>
    %201 = vector.shape_cast %197 : vector<8x8xf32> to vector<1x8x8xf32>
    %202 = vector.shape_cast %198 : vector<8x8xf32> to vector<1x8x8xf32>
    %203 = vector.shape_cast %199 : vector<8x8xf32> to vector<1x8x8xf32>
    %204 = tpu.concatenate %200, %201, %202, %203 in 0 : vector<1x8x8xf32>, vector<1x8x8xf32>, vector<1x8x8xf32>, vector<1x8x8xf32> -> vector<4x8x8xf32>
    %205 = arith.truncf %204 : vector<4x8x8xf32> to vector<4x8x8xbf16>
    %206 = vector.extract_strided_slice %194 {offsets = [0, 0], sizes = [8, 8], strides = [1, 1]} : vector<8x32xf32> to vector<8x8xf32>
    %207 = vector.extract_strided_slice %194 {offsets = [0, 8], sizes = [8, 8], strides = [1, 1]} : vector<8x32xf32> to vector<8x8xf32>
    %208 = vector.extract_strided_slice %194 {offsets = [0, 16], sizes = [8, 8], strides = [1, 1]} : vector<8x32xf32> to vector<8x8xf32>
    %209 = vector.extract_strided_slice %194 {offsets = [0, 24], sizes = [8, 8], strides = [1, 1]} : vector<8x32xf32> to vector<8x8xf32>
    %210 = vector.shape_cast %206 : vector<8x8xf32> to vector<1x8x8xf32>
    %211 = vector.shape_cast %207 : vector<8x8xf32> to vector<1x8x8xf32>
    %212 = vector.shape_cast %208 : vector<8x8xf32> to vector<1x8x8xf32>
    %213 = vector.shape_cast %209 : vector<8x8xf32> to vector<1x8x8xf32>
    %214 = tpu.concatenate %210, %211, %212, %213 in 0 : vector<1x8x8xf32>, vector<1x8x8xf32>, vector<1x8x8xf32>, vector<1x8x8xf32> -> vector<4x8x8xf32>
    %215 = arith.truncf %214 : vector<4x8x8xf32> to vector<4x8x8xbf16>
    %216 = vector.extract_strided_slice %195 {offsets = [0, 0], sizes = [8, 8], strides = [1, 1]} : vector<8x32xf32> to vector<8x8xf32>
    %217 = vector.extract_strided_slice %195 {offsets = [0, 8], sizes = [8, 8], strides = [1, 1]} : vector<8x32xf32> to vector<8x8xf32>
    %218 = vector.extract_strided_slice %195 {offsets = [0, 16], sizes = [8, 8], strides = [1, 1]} : vector<8x32xf32> to vector<8x8xf32>
    %219 = vector.extract_strided_slice %195 {offsets = [0, 24], sizes = [8, 8], strides = [1, 1]} : vector<8x32xf32> to vector<8x8xf32>
    %220 = vector.shape_cast %216 : vector<8x8xf32> to vector<1x8x8xf32>
    %221 = vector.shape_cast %217 : vector<8x8xf32> to vector<1x8x8xf32>
    %222 = vector.shape_cast %218 : vector<8x8xf32> to vector<1x8x8xf32>
    %223 = vector.shape_cast %219 : vector<8x8xf32> to vector<1x8x8xf32>
    %224 = tpu.concatenate %220, %221, %222, %223 in 0 : vector<1x8x8xf32>, vector<1x8x8xf32>, vector<1x8x8xf32>, vector<1x8x8xf32> -> vector<4x8x8xf32>
    %225 = arith.truncf %224 : vector<4x8x8xf32> to vector<4x8x8xbf16>
    %cst_76 = arith.constant dense<0.000000e+00> : vector<4x8x8xf32>
    %226 = tpu.matmul %205, %215, %cst_76 {dimension_numbers = #tpu.dot_dimension_numbers<[2], [2], [1], [1], [0, 0, 0, 1, 1, 1], [0], [0]>} : vector<4x8x8xbf16>, vector<4x8x8xbf16>, vector<4x8x8xf32> -> vector<4x8x8xf32>
    %227 = vector.shape_cast %7 : vector<8x8xf32> to vector<1x8x8xf32>
    %228 = vector.broadcast %227 : vector<1x8x8xf32> to vector<4x8x8xf32>
    %229 = arith.addf %226, %228 : vector<4x8x8xf32>
    %cst_77 = arith.constant dense<0xFF800000> : vector<4x8xf32>
    %230 = vector.multi_reduction <maximumf>, %229, %cst_77 [2] : vector<4x8x8xf32> to vector<4x8xf32>
    %231 = vector.shape_cast %230 : vector<4x8xf32> to vector<4x8x1xf32>
    %232 = vector.broadcast %231 : vector<4x8x1xf32> to vector<4x8x8xf32>
    %233 = arith.subf %229, %232 : vector<4x8x8xf32>
    %234 = math.exp %233 : vector<4x8x8xf32>
    %cst_78 = arith.constant dense<0.000000e+00> : vector<4x8xf32>
    %235 = vector.multi_reduction <add>, %234, %cst_78 [2] : vector<4x8x8xf32> to vector<4x8xf32>
    %236 = vector.shape_cast %235 : vector<4x8xf32> to vector<4x8x1xf32>
    %237 = vector.broadcast %236 : vector<4x8x1xf32> to vector<4x8x8xf32>
    %238 = arith.divf %234, %237 : vector<4x8x8xf32>
    %239 = arith.truncf %238 : vector<4x8x8xf32> to vector<4x8x8xbf16>
    %cst_79 = arith.constant dense<0.000000e+00> : vector<4x8x8xf32>
    %240 = tpu.matmul %239, %225, %cst_79 {dimension_numbers = #tpu.dot_dimension_numbers<[2], [1], [1], [2], [0, 0, 0, 1, 1, 2], [0], [0]>} : vector<4x8x8xbf16>, vector<4x8x8xbf16>, vector<4x8x8xf32> -> vector<4x8x8xf32>
    %241 = vector.extract_strided_slice %240 {offsets = [0, 0, 0], sizes = [1, 8, 8], strides = [1, 1, 1]} : vector<4x8x8xf32> to vector<1x8x8xf32>
    %242 = vector.shape_cast %241 : vector<1x8x8xf32> to vector<8x8xf32>
    %243 = vector.extract_strided_slice %240 {offsets = [1, 0, 0], sizes = [1, 8, 8], strides = [1, 1, 1]} : vector<4x8x8xf32> to vector<1x8x8xf32>
    %244 = vector.shape_cast %243 : vector<1x8x8xf32> to vector<8x8xf32>
    %245 = vector.extract_strided_slice %240 {offsets = [2, 0, 0], sizes = [1, 8, 8], strides = [1, 1, 1]} : vector<4x8x8xf32> to vector<1x8x8xf32>
    %246 = vector.shape_cast %245 : vector<1x8x8xf32> to vector<8x8xf32>
    %247 = vector.extract_strided_slice %240 {offsets = [3, 0, 0], sizes = [1, 8, 8], strides = [1, 1, 1]} : vector<4x8x8xf32> to vector<1x8x8xf32>
    %248 = vector.shape_cast %247 : vector<1x8x8xf32> to vector<8x8xf32>
    %249 = tpu.concatenate %242, %244, %246, %248 in 1 : vector<8x8xf32>, vector<8x8xf32>, vector<8x8xf32>, vector<8x8xf32> -> vector<8x32xf32>
    %250 = arith.truncf %249 : vector<8x32xf32> to vector<8x32xbf16>
    %c1_80 = arith.constant 1 : index
    %c0_81 = arith.constant 0 : index
    %c0_82 = arith.constant 0 : index
    %251 = vector.load %arg7[%c1_80, %c0_81, %c0_82] : memref<2x32x32xbf16, #tpu.memory_space<vmem>>, vector<1x32x32xbf16>
    %252 = vector.shape_cast %251 : vector<1x32x32xbf16> to vector<32x32xbf16>
    %cst_83 = arith.constant dense<0.000000e+00> : vector<8x32xf32>
    %253 = tpu.matmul %250, %252, %cst_83 {dimension_numbers = #tpu.dot_dimension_numbers<[1], [0], [0], [1], [0, 0, 1, 1], [], []>} : vector<8x32xbf16>, vector<32x32xbf16>, vector<8x32xf32> -> vector<8x32xf32>
    %254 = arith.addf %158, %253 : vector<8x32xf32>
    %c1_84 = arith.constant 1 : index
    %c0_85 = arith.constant 0 : index
    %c0_86 = arith.constant 0 : index
    %255 = vector.load %arg8[%c1_84, %c0_85, %c0_86] : memref<2x1x32xf32, #tpu.memory_space<vmem>>, vector<1x1x32xf32>
    %256 = vector.shape_cast %255 : vector<1x1x32xf32> to vector<1x32xf32>
    %257 = vector.broadcast %256 : vector<1x32xf32> to vector<8x32xf32>
    %258 = arith.addf %254, %257 : vector<8x32xf32>
    %c1_87 = arith.constant 1 : index
    %c0_88 = arith.constant 0 : index
    %c0_89 = arith.constant 0 : index
    %259 = vector.load %arg9[%c1_87, %c0_88, %c0_89] : memref<2x1x32xf32, #tpu.memory_space<vmem>>, vector<1x1x32xf32>
    %260 = vector.shape_cast %259 : vector<1x1x32xf32> to vector<1x32xf32>
    %c1_90 = arith.constant 1 : index
    %c0_91 = arith.constant 0 : index
    %c0_92 = arith.constant 0 : index
    %261 = vector.load %arg10[%c1_90, %c0_91, %c0_92] : memref<2x1x32xf32, #tpu.memory_space<vmem>>, vector<1x1x32xf32>
    %262 = vector.shape_cast %261 : vector<1x1x32xf32> to vector<1x32xf32>
    %cst_93 = arith.constant dense<0.000000e+00> : vector<8xf32>
    %263 = vector.multi_reduction <add>, %258, %cst_93 [1] : vector<8x32xf32> to vector<8xf32>
    %264 = vector.shape_cast %263 : vector<8xf32> to vector<8x1xf32>
    %cst_94 = arith.constant 3.200000e+01 : f32
    %265 = vector.broadcast %cst_94 : f32 to vector<8x1xf32>
    %266 = arith.divf %264, %265 : vector<8x1xf32>
    %267 = vector.broadcast %266 : vector<8x1xf32> to vector<8x32xf32>
    %268 = arith.subf %258, %267 : vector<8x32xf32>
    %269 = arith.mulf %268, %268 : vector<8x32xf32>
    %cst_95 = arith.constant dense<0.000000e+00> : vector<8xf32>
    %270 = vector.multi_reduction <add>, %269, %cst_95 [1] : vector<8x32xf32> to vector<8xf32>
    %271 = vector.shape_cast %270 : vector<8xf32> to vector<8x1xf32>
    %cst_96 = arith.constant 3.200000e+01 : f32
    %272 = vector.broadcast %cst_96 : f32 to vector<8x1xf32>
    %273 = arith.divf %271, %272 : vector<8x1xf32>
    %274 = vector.broadcast %266 : vector<8x1xf32> to vector<8x32xf32>
    %275 = arith.subf %258, %274 : vector<8x32xf32>
    %cst_97 = arith.constant 9.99999974E-6 : f32
    %276 = vector.broadcast %cst_97 : f32 to vector<8x1xf32>
    %277 = arith.addf %273, %276 : vector<8x1xf32>
    %278 = math.rsqrt %277 : vector<8x1xf32>
    %279 = vector.broadcast %278 : vector<8x1xf32> to vector<8x32xf32>
    %280 = arith.mulf %275, %279 : vector<8x32xf32>
    %281 = vector.broadcast %260 : vector<1x32xf32> to vector<8x32xf32>
    %282 = arith.mulf %280, %281 : vector<8x32xf32>
    %283 = vector.broadcast %262 : vector<1x32xf32> to vector<8x32xf32>
    %284 = arith.addf %282, %283 : vector<8x32xf32>
    %285 = arith.truncf %284 : vector<8x32xf32> to vector<8x32xbf16>
    %c1_98 = arith.constant 1 : index
    %c0_99 = arith.constant 0 : index
    %c0_100 = arith.constant 0 : index
    %286 = vector.load %arg11[%c1_98, %c0_99, %c0_100] : memref<2x32x128xbf16, #tpu.memory_space<vmem>>, vector<1x32x128xbf16>
    %287 = vector.shape_cast %286 : vector<1x32x128xbf16> to vector<32x128xbf16>
    %cst_101 = arith.constant dense<0.000000e+00> : vector<8x128xf32>
    %288 = tpu.matmul %285, %287, %cst_101 {dimension_numbers = #tpu.dot_dimension_numbers<[1], [0], [0], [1], [0, 0, 1, 1], [], []>} : vector<8x32xbf16>, vector<32x128xbf16>, vector<8x128xf32> -> vector<8x128xf32>
    %c1_102 = arith.constant 1 : index
    %c0_103 = arith.constant 0 : index
    %c0_104 = arith.constant 0 : index
    %289 = vector.load %arg12[%c1_102, %c0_103, %c0_104] : memref<2x1x128xf32, #tpu.memory_space<vmem>>, vector<1x1x128xf32>
    %290 = vector.shape_cast %289 : vector<1x1x128xf32> to vector<1x128xf32>
    %291 = vector.broadcast %290 : vector<1x128xf32> to vector<8x128xf32>
    %292 = arith.addf %288, %291 : vector<8x128xf32>
    %cst_105 = arith.constant 1.702000e+00 : f32
    %293 = vector.broadcast %cst_105 : f32 to vector<8x128xf32>
    %294 = arith.mulf %293, %292 : vector<8x128xf32>
    %295 = arith.negf %294 : vector<8x128xf32>
    %296 = math.exp %295 : vector<8x128xf32>
    %cst_106 = arith.constant 1.000000e+00 : f32
    %297 = vector.broadcast %cst_106 : f32 to vector<8x128xf32>
    %298 = arith.addf %297, %296 : vector<8x128xf32>
    %299 = arith.divf %297, %298 : vector<8x128xf32>
    %300 = arith.mulf %292, %299 : vector<8x128xf32>
    %301 = arith.truncf %300 : vector<8x128xf32> to vector<8x128xbf16>
    %c1_107 = arith.constant 1 : index
    %c0_108 = arith.constant 0 : index
    %c0_109 = arith.constant 0 : index
    %302 = vector.load %arg13[%c1_107, %c0_108, %c0_109] : memref<2x128x32xbf16, #tpu.memory_space<vmem>>, vector<1x128x32xbf16>
    %303 = vector.shape_cast %302 : vector<1x128x32xbf16> to vector<128x32xbf16>
    %cst_110 = arith.constant dense<0.000000e+00> : vector<8x32xf32>
    %304 = tpu.matmul %301, %303, %cst_110 {dimension_numbers = #tpu.dot_dimension_numbers<[1], [0], [0], [1], [0, 0, 1, 1], [], []>} : vector<8x128xbf16>, vector<128x32xbf16>, vector<8x32xf32> -> vector<8x32xf32>
    %305 = arith.addf %258, %304 : vector<8x32xf32>
    %c1_111 = arith.constant 1 : index
    %c0_112 = arith.constant 0 : index
    %c0_113 = arith.constant 0 : index
    %306 = vector.load %arg14[%c1_111, %c0_112, %c0_113] : memref<2x1x32xf32, #tpu.memory_space<vmem>>, vector<1x1x32xf32>
    %307 = vector.shape_cast %306 : vector<1x1x32xf32> to vector<1x32xf32>
    %308 = vector.broadcast %307 : vector<1x32xf32> to vector<8x32xf32>
    %309 = arith.addf %305, %308 : vector<8x32xf32>
    %310 = arith.index_cast %arg0 : i32 to index
    %311 = memref.load %arg1[%310] : memref<2xi32, #tpu.memory_space<smem>>
    %312 = tpu.iota {dimensions = array<i32: 1>} : vector<1x8xi32>
    %313 = vector.broadcast %311 : i32 to vector<1x8xi32>
    %314 = arith.cmpi eq, %312, %313 : vector<1x8xi32>
    %315 = arith.extui %314 : vector<1x8xi1> to vector<1x8xi32>
    %316 = arith.sitofp %315 : vector<1x8xi32> to vector<1x8xf32>
    %cst_114 = arith.constant dense<0.000000e+00> : vector<1x32xf32>
    %317 = tpu.matmul %316, %309, %cst_114 {dimension_numbers = #tpu.dot_dimension_numbers<[1], [0], [0], [1], [0, 0, 1, 1], [], []>} : vector<1x8xf32>, vector<8x32xf32>, vector<1x32xf32> -> vector<1x32xf32>
    %c0_115 = arith.constant 0 : index
    %c0_116 = arith.constant 0 : index
    %318 = vector.load %arg15[%c0_115, %c0_116] : memref<1x32xf32, #tpu.memory_space<vmem>>, vector<1x32xf32>
    %c0_117 = arith.constant 0 : index
    %c0_118 = arith.constant 0 : index
    %319 = vector.load %arg16[%c0_117, %c0_118] : memref<1x32xf32, #tpu.memory_space<vmem>>, vector<1x32xf32>
    %cst_119 = arith.constant dense<0.000000e+00> : vector<1xf32>
    %320 = vector.multi_reduction <add>, %317, %cst_119 [1] : vector<1x32xf32> to vector<1xf32>
    %321 = vector.shape_cast %320 : vector<1xf32> to vector<1x1xf32>
    %cst_120 = arith.constant 3.200000e+01 : f32
    %322 = vector.broadcast %cst_120 : f32 to vector<1x1xf32>
    %323 = arith.divf %321, %322 : vector<1x1xf32>
    %324 = vector.broadcast %323 : vector<1x1xf32> to vector<1x32xf32>
    %325 = arith.subf %317, %324 : vector<1x32xf32>
    %326 = arith.mulf %325, %325 : vector<1x32xf32>
    %cst_121 = arith.constant dense<0.000000e+00> : vector<1xf32>
    %327 = vector.multi_reduction <add>, %326, %cst_121 [1] : vector<1x32xf32> to vector<1xf32>
    %328 = vector.shape_cast %327 : vector<1xf32> to vector<1x1xf32>
    %cst_122 = arith.constant 3.200000e+01 : f32
    %329 = vector.broadcast %cst_122 : f32 to vector<1x1xf32>
    %330 = arith.divf %328, %329 : vector<1x1xf32>
    %331 = vector.broadcast %323 : vector<1x1xf32> to vector<1x32xf32>
    %332 = arith.subf %317, %331 : vector<1x32xf32>
    %cst_123 = arith.constant 9.99999974E-6 : f32
    %333 = vector.broadcast %cst_123 : f32 to vector<1x1xf32>
    %334 = arith.addf %330, %333 : vector<1x1xf32>
    %335 = math.rsqrt %334 : vector<1x1xf32>
    %336 = vector.broadcast %335 : vector<1x1xf32> to vector<1x32xf32>
    %337 = arith.mulf %332, %336 : vector<1x32xf32>
    %338 = arith.mulf %337, %318 : vector<1x32xf32>
    %339 = arith.addf %338, %319 : vector<1x32xf32>
    %340 = arith.truncf %339 : vector<1x32xf32> to vector<1x32xbf16>
    %c0_124 = arith.constant 0 : index
    %c0_125 = arith.constant 0 : index
    %341 = vector.load %arg17[%c0_124, %c0_125] : memref<32x16xbf16, #tpu.memory_space<vmem>>, vector<32x16xbf16>
    %cst_126 = arith.constant dense<0.000000e+00> : vector<1x16xf32>
    %342 = tpu.matmul %340, %341, %cst_126 {dimension_numbers = #tpu.dot_dimension_numbers<[1], [0], [0], [1], [0, 0, 1, 1], [], []>} : vector<1x32xbf16>, vector<32x16xbf16>, vector<1x16xf32> -> vector<1x16xf32>
    %c0_127 = arith.constant 0 : index
    %c0_128 = arith.constant 0 : index
    %c0_129 = arith.constant 0 : index
    %343 = vector.load %arg18[%c0_127, %c0_128, %c0_129] : memref<1x1x16xf32, #tpu.memory_space<vmem>>, vector<1x1x16xf32>
    %344 = vector.shape_cast %343 : vector<1x1x16xf32> to vector<1x16xf32>
    %345 = vector.shape_cast %342 : vector<1x16xf32> to vector<1x1x16xf32>
    tpu.vector_store %arg18[%c0_127, %c0_128, %c0_129], %345 {strides = array<i32>} : memref<1x1x16xf32, #tpu.memory_space<vmem>>, vector<1x1x16xf32>,
    return
  }
  func.func @transform_0(%arg0: i32, %arg1: memref<2xi32, #tpu.memory_space<smem>>) -> (i32, i32, i32) {
    %c0_i32 = arith.constant 0 : i32
    %c0_i32_0 = arith.constant 0 : i32
    %c0_i32_1 = arith.constant 0 : i32
    return %arg0, %c0_i32, %c0_i32_0 : i32, i32, i32
  }
  func.func @transform_1(%arg0: i32, %arg1: memref<2xi32, #tpu.memory_space<smem>>) -> (i32, i32, i32) {
    %c0_i32 = arith.constant 0 : i32
    %c0_i32_0 = arith.constant 0 : i32
    %c0_i32_1 = arith.constant 0 : i32
    %c0_i32_2 = arith.constant 0 : i32
    return %c0_i32, %c0_i32_0, %c0_i32_1 : i32, i32, i32
  }
  func.func @transform_2(%arg0: i32, %arg1: memref<2xi32, #tpu.memory_space<smem>>) -> (i32, i32, i32) {
    %c0_i32 = arith.constant 0 : i32
    %c0_i32_0 = arith.constant 0 : i32
    %c0_i32_1 = arith.constant 0 : i32
    %c0_i32_2 = arith.constant 0 : i32
    return %c0_i32, %c0_i32_0, %c0_i32_1 : i32, i32, i32
  }
  func.func @transform_3(%arg0: i32, %arg1: memref<2xi32, #tpu.memory_space<smem>>) -> (i32, i32, i32) {
    %c0_i32 = arith.constant 0 : i32
    %c0_i32_0 = arith.constant 0 : i32
    %c0_i32_1 = arith.constant 0 : i32
    %c0_i32_2 = arith.constant 0 : i32
    return %c0_i32, %c0_i32_0, %c0_i32_1 : i32, i32, i32
  }
  func.func @transform_4(%arg0: i32, %arg1: memref<2xi32, #tpu.memory_space<smem>>) -> (i32, i32, i32) {
    %c0_i32 = arith.constant 0 : i32
    %c0_i32_0 = arith.constant 0 : i32
    %c0_i32_1 = arith.constant 0 : i32
    %c0_i32_2 = arith.constant 0 : i32
    return %c0_i32, %c0_i32_0, %c0_i32_1 : i32, i32, i32
  }
  func.func @transform_5(%arg0: i32, %arg1: memref<2xi32, #tpu.memory_space<smem>>) -> (i32, i32, i32) {
    %c0_i32 = arith.constant 0 : i32
    %c0_i32_0 = arith.constant 0 : i32
    %c0_i32_1 = arith.constant 0 : i32
    %c0_i32_2 = arith.constant 0 : i32
    return %c0_i32, %c0_i32_0, %c0_i32_1 : i32, i32, i32
  }
  func.func @transform_6(%arg0: i32, %arg1: memref<2xi32, #tpu.memory_space<smem>>) -> (i32, i32, i32) {
    %c0_i32 = arith.constant 0 : i32
    %c0_i32_0 = arith.constant 0 : i32
    %c0_i32_1 = arith.constant 0 : i32
    %c0_i32_2 = arith.constant 0 : i32
    return %c0_i32, %c0_i32_0, %c0_i32_1 : i32, i32, i32
  }
  func.func @transform_7(%arg0: i32, %arg1: memref<2xi32, #tpu.memory_space<smem>>) -> (i32, i32, i32) {
    %c0_i32 = arith.constant 0 : i32
    %c0_i32_0 = arith.constant 0 : i32
    %c0_i32_1 = arith.constant 0 : i32
    %c0_i32_2 = arith.constant 0 : i32
    return %c0_i32, %c0_i32_0, %c0_i32_1 : i32, i32, i32
  }
  func.func @transform_8(%arg0: i32, %arg1: memref<2xi32, #tpu.memory_space<smem>>) -> (i32, i32, i32) {
    %c0_i32 = arith.constant 0 : i32
    %c0_i32_0 = arith.constant 0 : i32
    %c0_i32_1 = arith.constant 0 : i32
    %c0_i32_2 = arith.constant 0 : i32
    return %c0_i32, %c0_i32_0, %c0_i32_1 : i32, i32, i32
  }
  func.func @transform_9(%arg0: i32, %arg1: memref<2xi32, #tpu.memory_space<smem>>) -> (i32, i32, i32) {
    %c0_i32 = arith.constant 0 : i32
    %c0_i32_0 = arith.constant 0 : i32
    %c0_i32_1 = arith.constant 0 : i32
    %c0_i32_2 = arith.constant 0 : i32
    return %c0_i32, %c0_i32_0, %c0_i32_1 : i32, i32, i32
  }
  func.func @transform_10(%arg0: i32, %arg1: memref<2xi32, #tpu.memory_space<smem>>) -> (i32, i32, i32) {
    %c0_i32 = arith.constant 0 : i32
    %c0_i32_0 = arith.constant 0 : i32
    %c0_i32_1 = arith.constant 0 : i32
    %c0_i32_2 = arith.constant 0 : i32
    return %c0_i32, %c0_i32_0, %c0_i32_1 : i32, i32, i32
  }
  func.func @transform_11(%arg0: i32, %arg1: memref<2xi32, #tpu.memory_space<smem>>) -> (i32, i32, i32) {
    %c0_i32 = arith.constant 0 : i32
    %c0_i32_0 = arith.constant 0 : i32
    %c0_i32_1 = arith.constant 0 : i32
    %c0_i32_2 = arith.constant 0 : i32
    return %c0_i32, %c0_i32_0, %c0_i32_1 : i32, i32, i32
  }
  func.func @transform_12(%arg0: i32, %arg1: memref<2xi32, #tpu.memory_space<smem>>) -> (i32, i32, i32) {
    %c0_i32 = arith.constant 0 : i32
    %c0_i32_0 = arith.constant 0 : i32
    %c0_i32_1 = arith.constant 0 : i32
    %c0_i32_2 = arith.constant 0 : i32
    return %c0_i32, %c0_i32_0, %c0_i32_1 : i32, i32, i32
  }
  func.func @transform_13(%arg0: i32, %arg1: memref<2xi32, #tpu.memory_space<smem>>) -> (i32, i32) {
    %c0_i32 = arith.constant 0 : i32
    %c0_i32_0 = arith.constant 0 : i32
    %c0_i32_1 = arith.constant 0 : i32
    return %c0_i32, %c0_i32_0 : i32, i32
  }
  func.func @transform_14(%arg0: i32, %arg1: memref<2xi32, #tpu.memory_space<smem>>) -> (i32, i32) {
    %c0_i32 = arith.constant 0 : i32
    %c0_i32_0 = arith.constant 0 : i32
    %c0_i32_1 = arith.constant 0 : i32
    return %c0_i32, %c0_i32_0 : i32, i32
  }
  func.func @transform_15(%arg0: i32, %arg1: memref<2xi32, #tpu.memory_space<smem>>) -> (i32, i32) {
    %c0_i32 = arith.constant 0 : i32
    %c0_i32_0 = arith.constant 0 : i32
    %c0_i32_1 = arith.constant 0 : i32
    return %c0_i32, %c0_i32_0 : i32, i32
  }
  func.func @transform_16(%arg0: i32, %arg1: memref<2xi32, #tpu.memory_space<smem>>) -> (i32, i32, i32) {
    %c0_i32 = arith.constant 0 : i32
    %c0_i32_0 = arith.constant 0 : i32
    %c0_i32_1 = arith.constant 0 : i32
    return %arg0, %c0_i32, %c0_i32_0 : i32, i32, i32
  }
}

</mosaic_0001>

<bundles_post_ra>
// kernel: tpu_custom_call.1
= control target key start
LH: loop header
LB: loop body
LE: loop exit
PB: predicated region body
PF: predicated region fallthrough
CT: control target
= control target key end

     0   :  { %s3690_s0 = inlined_call_operand.vmem [shape: s32[2], index: 0, kind: input, shape index: {}]   ;;  %s3691_s1 = inlined_call_operand.vmem [shape: f32[2,8,32], index: 1, kind: input, shape index: {}]   ;;  %s3692_s2 = inlined_call_operand.vmem [shape: f32[2,1,32], index: 2, kind: input, shape index: {}]   ;;  %s3693_s3 = inlined_call_operand.vmem [shape: f32[2,1,32], index: 3, kind: input, shape index: {}]   ;;  %s3694_s4 = inlined_call_operand.vmem [shape: bf16[2,32,96], index: 4, kind: input, shape index: {}]   ;;  %s3695_s5 = inlined_call_operand.vmem [shape: f32[2,1,96], index: 5, kind: input, shape index: {}]   ;;  %s3696_s6 = inlined_call_operand.vmem [shape: bf16[2,32,32], index: 6, kind: input, shape index: {}]   ;;  %s3697_s7 = inlined_call_operand.vmem [shape: f32[2,1,32], index: 7, kind: input, shape index: {}]   ;;  %s3698_s8 = inlined_call_operand.vmem [shape: f32[2,1,32], index: 8, kind: input, shape index: {}]   ;;  %s3699_s9 = inlined_call_operand.vmem [shape: f32[2,1,32], index: 9, kind: input, shape index: {}]   ;;  %s3700_s10 = inlined_call_operand.vmem [shape: bf16[2,32,128], index: 10, kind: input, shape index: {}]   ;;  %s3701_s11 = inlined_call_operand.vmem [shape: f32[2,1,128], index: 11, kind: input, shape index: {}]   ;;  %s3702_s12 = inlined_call_operand.vmem [shape: bf16[2,128,32], index: 12, kind: input, shape index: {}]   ;;  %s3703_s13 = inlined_call_operand.vmem [shape: f32[2,1,32], index: 13, kind: input, shape index: {}]   ;;  %s3704_s14 = inlined_call_operand.vmem [shape: f32[1,32], index: 14, kind: input, shape index: {}]   ;;  %s3705_s15 = inlined_call_operand.vmem [shape: f32[1,32], index: 15, kind: input, shape index: {}]   ;;  %s3706_s16 = inlined_call_operand.vmem [shape: bf16[32,16], index: 16, kind: input, shape index: {}]   ;;  %s3707_s17 = inlined_call_operand.hbm [shape: f32[2,1,16], index: 17, kind: output, shape index: {}]  }
   0x1   :  { %3719 = sst [smem:[#allocation8_spill]] %s3690_s0 }
   0x2   :  { %3720 = sst [smem:[#allocation9_spill]] %s3691_s1  ;;  %s3726_s26 = sld [smem:[#allocation8_spill]] }
   0x3   :  { %3721 = sst [smem:[#allocation10_spill]] %s3692_s2 }
   0x4   :  { %3722 = sst [smem:[#allocation11_spill]] %s3693_s3 }
   0x5   :  { %3723 = sst [smem:[#allocation12_spill]] %s3694_s4 }
   0x6   :  { %3724 = sst [smem:[#allocation13_spill]] %s3695_s5 }
   0x7   :  { %3725 = sst [smem:[#allocation14_spill]] %s3701_s11 }
   0x8   :  { %s22_s11 = sshll.u32 %s3726_s26, 4  ;;  %s23_s11 = int_to_ptr.vmem [resolvable:$true] %s22_s11 }
   0x9   :  { %s2989_s27 = scalar_lea.vmem %s23_s11, 16  ;;  %p2994_p1 = scmp.lt.s32.totalorder %s23_s11, %s23_s11 }
   0xa   :  { %p2990_p0 = scmp.ne.s32.totalorder %s23_s11, %s2989_s27  ;;  %p2995_p2 = scmp.lt.s32.totalorder %s2989_s27, %s2989_s27 }
   0xc   :  { %p2996_p3 = por %p2995_p2, %p2994_p1 }
   0xe   :  { %p2997_p4 = pnand %p2996_p3, %p2990_p0 }
  0x10   :  { %3000 = shalt.err (!%p2997_p4)  }
  0x11   :  { %s3067_s28 = smov [#allocation3]  }
  0x12   :  { %25 = dma.vmem_to_smem %s23_s11, 16, %s3067_s28, [#allocation2] }
  0x13   :  { %3045 = dma.done.wait [#allocation2], 16 }
  0x14   :  { %3046 = vsyncadd [#allocation2], 4294967280 }
  0x15   :  { %27 = sfence }
  0x16   :  { %28 = vsyncpa [#allocation5], 0 }
  0x17   :  { %30 = vsyncpa [#allocation5 + $0x1], 0  ;;  %s3173_s29 = smov 0   ;;  %s3175_s0 = smov 0  }
  0x18   :  { %s3177_s30 = smov 0   ;;  %s3179_s18 = smov 0  }
  0x19 LB: > { %s3194_s11 = sadd.s32 4294967295, %s3065_s18   ;;  %s2471_s19 = sadd.s32 4294967294, %s3065_s18   ;;  %s3065_s18 = sphi %s3179_s18, %s3746_s18   ;;  %s3061_s30 = sphi %s3177_s30, %s3745_s30   ;;  %s3057_s0 = sphi %s3175_s0, %s3744_s0   ;;  %s3053_s29 = sphi %s3173_s29, %s3743_s29  }
  0x1a   : > { %s3198_s1 = sadd.s32 1, %s3065_s18   ;;  %s384_s20 = sadd.s32 1, %s3061_s30 }
  0x1b   : > { %s381_s21 = ssub.s32 %s3065_s18, %s3198_s1  ;;  %p394_p5 = scmp.ne.s32.totalorder %s3061_s30, %s3057_s0 }
  0x1c   : > { %p382_p6 = scmp.eq.s32.totalorder %s381_s21, 0  ;;  %p395_p7 = scmp.eq.s32.totalorder %s3194_s11, 1 }
  0x1d   : > { %p400_p8 = scmp.ne.s32.totalorder %s3057_s0, %s3053_s29  ;;  %p401_p9 = scmp.eq.s32.totalorder %s2471_s19, 1 }
  0x1e   : > { %s3209_s22 = scalar_select %p382_p6, %s3061_s30, %s384_s20  }
  0x1f   : > { %p3211_p10 = por %p395_p7, %p394_p5  ;;  %p3215_p11 = por %p401_p9, %p400_p8 }
  0x20   : > { %p2474_p12 = scmp.ge.s32.totalorder %s3065_s18, 1  ;;  %p471_p13 = scmp.lt.s32.totalorder %s3065_s18, 3 }
  0x22   : > { %p472_p0 = pnand %p2474_p12, %p471_p13 }
  0x23   : > { %p519_p1 = scmp.lt.s32.totalorder (!%p472_p0), %s3194_s11, 1  ;;  %vm533_vm0 = vcmask (!%p472_p0), 261120   ;;  %s3729_s19 = sld [smem:[#allocation9_spill]] (!%p472_p0)  ;;  %v3068_v8 = vmov (!%p472_p0), 0.0   ;;  %vm3069_vm1 = vmmov (!%p472_p0), 0   ;;  %vm646_vm2 = vcmask (!%p472_p0), 64512  }
  0x24   : > { %475 = sbr.rel (%p472_p0) target bundleno = 6069 (0x17b5), region = 84  ;;  %s3730_s4 = sld [smem:[#allocation12_spill]] (!%p472_p0)  ;;  %2661 = vmatprep.subr.bf16.mxu1 (!%p472_p0), %v3068_v8  ;;  %2665 = vmatprep.mubr.msk.bf16.mxu1 (!%p472_p0), %vm3069_vm1, %v3068_v8  ;;  %v525_v41 = vlaneseq (!%p472_p0)  ;;  %v3074_v44 = vmov (!%p472_p0), -1e+30   ;;  %vm893_vm4 = vcmask (!%p472_p0), 1043456   ;;  %vm1094_vm5 = vcmask (!%p472_p0), 130048  }
  0x25   : > { %2675 = vmatprep.subr.bf16.mxu0 (!%p472_p0), %v3068_v8  ;;  %2677 = vmatprep.mubr.msk.bf16.mxu0 (!%p472_p0), %vm3069_vm1, %v3068_v8  ;;  %s3731_s2 = sld [smem:[#allocation10_spill]] (!%p472_p0)  ;;  %s3732_s3 = sld [smem:[#allocation11_spill]] (!%p472_p0)  ;;  %vm1096_vm6 = vcmask (!%p472_p0), 195584   ;;  %vm2325_vm8 = vcmask (!%p472_p0), 253952   ;;  %vm2401_vm9 = vcmask (!%p472_p0), 122880  }
  0x26   : > { %s3733_s5 = sld [smem:[#allocation13_spill]] (!%p472_p0)  ;;  %s3713_s27 = smov (!%p472_p0), 104   ;;  %v526_v42 = vshrl.u32 (!%p472_p0), %v525_v41, 7  ;;  %v3301_v43 = vand.u32 (!%p472_p0), 127, %v525_v41 }
  0x27   : > { %s3717_s28 = smov (!%p472_p0), 120   ;;  %s3709_s21 = smov (!%p472_p0), 64  }
  0x28   : > { %vm529_vm3 = vcmp.le.s32.totalorder (!%p472_p0), %v3301_v43, %v526_v42 }
  0x29   : > { %v3304_v45 = vsel (!%p472_p0), %vm529_vm3, 0.0, %v3074_v44 }
  0x2a   : > { %v2909_v7 = vld [vmem:[%s3730_s4] sm:$0xff] (!%p472_p0)   ;;  %v2910_v9 = vld [vmem:[%s3730_s4 + $0x8] sm:$0xff] (!%p472_p0)  }
  0x2b   : > { %s520_s25 = scalar_select %p519_p1, %s3194_s11, 1  ;;  %2662 = vmatpush3.bf16.msra.mxu1 %v2909_v7  ;;  %v2476_v14 = vld [vmem:[%s3731_s2] ss:$0 sm:$0xff] }
  0x2c   : > { %2663 = vmatprep.subr.bf16.mxu1 %v3068_v8  ;;  %v2477_v16 = vld [vmem:[%s3732_s3] ss:$0 sm:$0xff] }
  0x2d   : > { %s2475_s26 = sshll.u32 %s520_s25, 3  ;;  %v2478_v20 = vld [vmem:[%s3733_s5] ss:$0 sm:$0xff]  ;;  %s3715_s25 = smov 16  }
  0x2e   : > { %s522_s20 = scalar_lea.vmem %s3729_s19, %s2475_s26  ;;  %s3718_s19 = smov 112  }
  0x2f   : > { %v3226_v0 = vld [vmem:[%s522_s20] sm:$0xff]  ;;  %2664 = vmatpush3.bf16.msra.mxu1 %v2910_v9  ;;  %s3711_s20 = smov 96   ;;  %s3735_s26 = smov 112  }
  0x30   : > { %v534_v1 = vsel %vm533_vm0, %v3226_v0, 0.0  ;;  %2669 = vmatprep.subr.bf16.mxu1 %v3068_v8 }
  0x31   : > { %535 = vadd.xlane.f32.xlu0 %v534_v1 }
  0xbe   : > { %v536_v2 = vpop.xlane.xlu0 %535 }
  0xbf   : > { %v538_v3 = vmul.f32 0.03125, %v536_v2 }
  0xc1   : > { %v539_v4 = vsub.f32 %v3226_v0, %v538_v3 }
  0xc3   : > { %v540_v5 = vmul.f32 %v539_v4, %v539_v4 }
  0xc5   : > { %v541_v6 = vsel %vm533_vm0, %v540_v5, 0.0 }
  0xc6   : > { %542 = vadd.xlane.f32.xlu0 %v541_v6 }
 0x153   : > { %v543_v10 = vpop.xlane.xlu0 %542 }
 0x154   : > { %v544_v11 = vmul.f32 0.03125, %v543_v10 }
 0x156   : > { %v545_v12 = vadd.f32 1e-05, %v544_v11 }
 0x158   : > { %2939 = vrsqrt.f32 %v545_v12 }
 0x162   : > { %v2940_v13 = vpop.eup %2939 }
 0x163   : > { %v547_v15 = vmul.f32 %v2940_v13, %v539_v4 }
 0x165   : > { %v554_v17 = vmul.f32 %v2476_v14, %v547_v15 }
 0x167   : > { %v561_v18 = vadd.f32 %v2477_v16, %v554_v17 }
 0x169   : > { %v562_v19 = vpack.c.bf16 %v561_v18, %v561_v18 }
 0x16b   : > { %2666 = vmatmul.mubr.msk.bf16.vlgmr.msra.gmra.mrb[0].mxu1 %vm533_vm0, %v562_v19 }
 0x16c   : > { %2671 = vmatprep.mubr.msk.bf16.mxu1 %vm3069_vm1, %v3068_v8 }
 0x23e   : > { %v623_v21 = vpop.f32.mrb[0].mxu1 }
 0x23f   : > { %v624_v22 = vadd.f32 %v2478_v20, %v623_v21  ;;  %v2667_v23 = vpop.f32.mrb[1].mxu1 }
 0x240   : > { %v626_v24 = vpop.f32.mrb[2].mxu1 }
 0x241   : > { %636 = vrot.lane.b32.xlu0 %v624_v22, %s3713_s27  ;;  %630 = vrot.lane.b32.xlu1 %v624_v22, %s3717_s28  ;;  %v2668_v25 = vpop.f32.mrb[3].mxu1  ;;  %v3261_v26 = vpack.c.bf16 %v624_v22, %v624_v22  ;;  %s3716_s27 = smov 8   ;;  %s3742_s28 = smov 24  }
 0x245   : > { %633 = vrot.lane.b32.xlu1 %v624_v22, %s3718_s19  ;;  %s3736_s19 = smov 120  }
 0x249   : > { %644 = vrot.lane.b32.xlu1 %v3261_v26, %s3711_s20 }
 0x2b3   : > { %v631_v27 = vpop.permute.xlu1 %630  ;;  %v637_v31 = vpop.permute.xlu0 %636 }
 0x2b4   : > { %v3265_v28 = vpack.c.bf16 %v631_v27, %v631_v27  ;;  %v3273_v33 = vpack.c.bf16 %v637_v31, %v637_v31 }
 0x2b6   : > { %694 = vrot.lane.b32.xlu1 %v3265_v28, %s3711_s20 }
 0x2b7   : > { %v634_v29 = vpop.permute.xlu1 %633 }
 0x2b8   : > { %v3269_v30 = vpack.c.bf16 %v634_v29, %v634_v29 }
 0x2ba   : > { %743 = vrot.lane.b32.xlu1 %v3269_v30, %s3711_s20 }
 0x2bb   : > { %v645_v32 = vpop.permute.xlu1 %644 }
 0x2bc   : > { %v651_v34 = vsel %vm646_vm2, %v645_v32, 0 }
 0x2bd   : > { %2670 = vmatpush3.bf16.xpose.msra.mxu1 %v651_v34 }
 0x2be   : > { %792 = vrot.lane.b32.xlu1 %v3273_v33, %s3711_s20  ;;  %2681 = vmatprep.subr.bf16.mxu1 %v3068_v8  ;;  %s3714_s20 = smov 24  }
 0x2c4   : > { %2672 = vmatmul.mubr.msk.bf16.vlgmr.msra.gmra.mrb[4].mxu1 %vm646_vm2, %v3261_v26 }
 0x2c5   : > { %2683 = vmatprep.mubr.msk.bf16.mxu1 %vm3069_vm1, %v3068_v8 }
 0x328   : > { %v695_v35 = vpop.permute.xlu1 %694 }
 0x329   : > { %v700_v36 = vsel %vm646_vm2, %v695_v35, 0 }
 0x32a   : > { %2676 = vmatpush3.bf16.xpose.msra.mxu0 %v700_v36 }
 0x32b   : > { %2687 = vmatprep.subr.bf16.mxu0 %v3068_v8 }
 0x32c   : > { %v744_v37 = vpop.permute.xlu1 %743 }
 0x32d   : > { %v749_v38 = vsel %vm646_vm2, %v744_v37, 0 }
 0x32e   : > { %2682 = vmatpush3.bf16.xpose.msra.mxu1 %v749_v38 }
 0x32f   : > { %2693 = vmatprep.subr.bf16.mxu1 %v3068_v8 }
 0x330   : > { %v793_v39 = vpop.permute.xlu1 %792 }
 0x331   : > { %v798_v40 = vsel %vm646_vm2, %v793_v39, 0  ;;  %2678 = vmatmul.mubr.msk.bf16.vlgmr.msra.gmra.mrb[0].mxu0 %vm646_vm2, %v3265_v28 }
 0x332   : > { %2688 = vmatpush3.bf16.xpose.msra.mxu0 %v798_v40  ;;  %2689 = vmatprep.mubr.msk.bf16.mxu0 %vm3069_vm1, %v3068_v8 }
 0x333   : > { %2699 = vmatprep.subr.bf16.mxu0 %v3068_v8 }
 0x335   : > { %2684 = vmatmul.mubr.msk.bf16.vlgmr.msra.gmra.mrb[8].mxu1 %vm646_vm2, %v3269_v30 }
 0x336   : > { %2695 = vmatprep.mubr.msk.bf16.mxu1 %vm3069_vm1, %v3068_v8 }
 0x339   : > { %2690 = vmatmul.mubr.msk.bf16.vlgmr.msra.gmra.mrb[4].mxu0 %vm646_vm2, %v3273_v33 }
 0x33a   : > { %2701 = vmatprep.mubr.msk.bf16.mxu0 %vm3069_vm1, %v3068_v8 }
 0x397   : > { %v687_v46 = vpop.f32.mrb[4].mxu1 }
 0x398   : > { %v688_v47 = vadd.f32 %v687_v46, %v3304_v45  ;;  %v2673_v48 = vpop.f32.mrb[5].mxu1 }
 0x399   : > { %v690_v49 = vpop.f32.mrb[6].mxu1 }
 0x39a   : > { %v2674_v50 = vpop.f32.mrb[7].mxu1  ;;  %v840_v51 = vsel %vm646_vm2, %v688_v47, -inf }
 0x39b   : > { %841 = vmax.xlane.f32.xlu1 %v840_v51 }
 0x404   : > { %v736_v52 = vpop.f32.mrb[0].mxu0 }
 0x405   : > { %v737_v53 = vadd.f32 %v736_v52, %v3304_v45  ;;  %v2679_v54 = vpop.f32.mrb[1].mxu0 }
 0x406   : > { %v739_v55 = vpop.f32.mrb[2].mxu0 }
 0x407   : > { %v2680_v56 = vpop.f32.mrb[3].mxu0  ;;  %v843_v57 = vsel %vm646_vm2, %v737_v53, -inf }
 0x408   : > { %844 = vmax.xlane.f32.xlu0 %v843_v57  ;;  %v785_v58 = vpop.f32.mrb[8].mxu1 }
 0x409   : > { %v786_v59 = vadd.f32 %v785_v58, %v3304_v45  ;;  %v2685_v60 = vpop.f32.mrb[9].mxu1  ;;  %v2911_v58 = vld [vmem:[%s3696_s6] sm:$0xff]  }
 0x40a   : > { %v788_v61 = vpop.f32.mrb[10].mxu1 }
 0x40b   : > { %v2686_v62 = vpop.f32.mrb[11].mxu1  ;;  %v846_v63 = vsel %vm646_vm2, %v786_v59, -inf }
 0x40c   : > { %v834_v1 = vpop.f32.mrb[4].mxu0  ;;  %847 = vmax.xlane.f32.xlu1 %v846_v63 }
 0x40d   : > { %v835_v2 = vadd.f32 %v834_v1, %v3304_v45  ;;  %v2691_v3 = vpop.f32.mrb[5].mxu0 }
 0x40e   : > { %v837_v4 = vpop.f32.mrb[6].mxu0 }
 0x40f   : > { %v2692_v5 = vpop.f32.mrb[7].mxu0  ;;  %v849_v6 = vsel %vm646_vm2, %v835_v2, -inf }
 0x410   : > { %850 = vmax.xlane.f32.xlu0 %v849_v6 }
 0x41d   : > { %888 = vrot.lane.b32.xlu1 %v3261_v26, %s3709_s21 }
 0x428   : > { %v842_v7 = vpop.xlane.xlu1 %841 }
 0x429   : > { %v852_v9 = vsub.f32 %v688_v47, %v842_v7 }
 0x42b   : > { %v856_v10 = vmul.f32 1.442695, %v852_v9 }
 0x42d   : > { %2941 = vpow2.f32 %v856_v10 }
 0x437   : > { %v2942_v11 = vpop.eup %2941 }
 0x438   : > { %v864_v12 = vsel %vm646_vm2, %v2942_v11, 0.0 }
 0x441   : > { %865 = vadd.xlane.f32.xlu1 %v864_v12 }
 0x495   : > { %v845_v13 = vpop.xlane.xlu0 %844 }
 0x496   : > { %v853_v14 = vsub.f32 %v737_v53, %v845_v13 }
 0x498   : > { %v858_v15 = vmul.f32 1.442695, %v853_v14 }
 0x499   : > { %v848_v16 = vpop.xlane.xlu1 %847 }
 0x49a   : > { %2943 = vpow2.f32 %v858_v15  ;;  %v854_v17 = vsub.f32 %v786_v59, %v848_v16  ;;  %v2912_v59 = vld [vmem:[%s3696_s6 + $0x8] sm:$0xff]  }
 0x49c   : > { %v860_v18 = vmul.f32 1.442695, %v854_v17 }
 0x49d   : > { %v851_v19 = vpop.xlane.xlu0 %850  ;;  %v889_v20 = vpop.permute.xlu1 %888 }
 0x49e   : > { %2945 = vpow2.f32 %v860_v18  ;;  %v855_v21 = vsub.f32 %v835_v2, %v851_v19  ;;  %v895_v22 = vsel %vm893_vm4, %v889_v20, 0  ;;  %v2493_v18 = vld [vmem:[%s3697_s7] ss:$0 sm:$0xff] }
 0x49f   : > { %2694 = vmatpush3.bf16.msra.mxu1 %v895_v22 }
 0x4a0   : > { %v862_v23 = vmul.f32 1.442695, %v855_v21  ;;  %2705 = vmatprep.subr.bf16.mxu1 %v3068_v8 }
 0x4a2   : > { %2947 = vpow2.f32 %v862_v23 }
 0x4a4   : > { %v2944_v24 = vpop.eup %2943 }
 0x4a5   : > { %v867_v25 = vsel %vm646_vm2, %v2944_v24, 0.0 }
 0x4a6   : > { %868 = vadd.xlane.f32.xlu0 %v867_v25 }
 0x4a8   : > { %v2946_v26 = vpop.eup %2945 }
 0x4a9   : > { %v870_v27 = vsel %vm646_vm2, %v2946_v26, 0.0 }
 0x4aa   : > { %871 = vadd.xlane.f32.xlu1 %v870_v27 }
 0x4ac   : > { %v2948_v29 = vpop.eup %2947 }
 0x4ad   : > { %v873_v31 = vsel %vm646_vm2, %v2948_v29, 0.0 }
 0x4ae   : > { %874 = vadd.xlane.f32.xlu0 %v873_v31 }
 0x4bb   : > { %985 = vrot.lane.b32.xlu1 %v3269_v30, %s3709_s21 }
 0x4bf   : > { %1033 = vrot.lane.b32.xlu1 %v3273_v33, %s3709_s21 }
 0x4c4   : > { %937 = vrot.lane.b32.xlu0 %v3265_v28, %s3709_s21  ;;  %s3734_s21 = sld [smem:[#allocation14_spill]] }
 0x4ce   : > { %v866_v32 = vpop.xlane.xlu1 %865 }
 0x4cf   : > { %2949 = vrcp.f32 %v866_v32  ;;  %v2914_v32 = vld [vmem:[%s3700_s10 + $0x8] sm:$0xff]  }
 0x4d9   : > { %v2950_v34 = vpop.eup %2949 }
 0x4da   : > { %v877_v35 = vmul.f32 %v2950_v34, %v2942_v11 }
 0x4dc   : > { %v884_v36 = vpack.c.bf16 %v877_v35, %v877_v35 }
 0x4de   : > { %2696 = vmatmul.mubr.msk.bf16.vlgmr.msra.gmra.mrb[12].mxu1 %vm646_vm2, %v884_v36 }
 0x4df   : > { %2707 = vmatprep.mubr.msk.bf16.mxu1 %vm3069_vm1, %v3068_v8 }
 0x533   : > { %v869_v37 = vpop.xlane.xlu0 %868 }
 0x534   : > { %2951 = vrcp.f32 %v869_v37 }
 0x537   : > { %v872_v38 = vpop.xlane.xlu1 %871 }
 0x538   : > { %2953 = vrcp.f32 %v872_v38  ;;  %v2494_v38 = vld [vmem:[%s3698_s8] ss:$0 sm:$0xff] }
 0x53b   : > { %v875_v30 = vpop.xlane.xlu0 %874  ;;  %v986_v39 = vpop.permute.xlu1 %985 }
 0x53c   : > { %2955 = vrcp.f32 %v875_v30  ;;  %v991_v33 = vsel %vm893_vm4, %v986_v39, 0  ;;  %v2495_v39 = vld [vmem:[%s3699_s9] ss:$0 sm:$0xff] }
 0x53d   : > { %2706 = vmatpush3.bf16.msra.mxu1 %v991_v33 }
 0x53e   : > { %v2952_v28 = vpop.eup %2951  ;;  %2717 = vmatprep.subr.bf16.mxu1 %v3068_v8 }
 0x53f   : > { %v879_v40 = vmul.f32 %v2952_v28, %v2944_v24  ;;  %v938_v41 = vpop.permute.xlu0 %937  ;;  %v1034_v44 = vpop.permute.xlu1 %1033 }
 0x540   : > { %v943_v42 = vsel %vm893_vm4, %v938_v41, 0  ;;  %v1039_v49 = vsel %vm893_vm4, %v1034_v44, 0  ;;  %v2915_v41 = vld [vmem:[%s3702_s12] sm:$0xff]   ;;  %v2917_v44 = vld [vmem:[%s3702_s12 + $0x10] sm:$0xff]  }
 0x541   : > { %2700 = vmatpush3.bf16.msra.mxu0 %v943_v42  ;;  %v885_v46 = vpack.c.bf16 %v879_v40, %v879_v40  ;;  %v2916_v42 = vld [vmem:[%s3702_s12 + $0x8] sm:$0xff]  }
 0x542   : > { %v2954_v47 = vpop.eup %2953  ;;  %2711 = vmatprep.subr.bf16.mxu0 %v3068_v8 }
 0x543   : > { %v881_v48 = vmul.f32 %v2954_v47, %v2946_v26  ;;  %v2919_v47 = vld [vmem:[%s3702_s12 + $0x20] sm:$0xff]  }
 0x544   : > { %2702 = vmatmul.mubr.msk.bf16.vlgmr.msra.gmra.mrb[8].mxu0 %vm646_vm2, %v885_v46  ;;  %v2918_v46 = vld [vmem:[%s3702_s12 + $0x18] sm:$0xff]  }
 0x545   : > { %2712 = vmatpush3.bf16.msra.mxu0 %v1039_v49  ;;  %v886_v50 = vpack.c.bf16 %v881_v48, %v881_v48  ;;  %2713 = vmatprep.mubr.msk.bf16.mxu0 %vm3069_vm1, %v3068_v8  ;;  %v2920_v48 = vld [vmem:[%s3702_s12 + $0x28] sm:$0xff]   ;;  %v2921_v49 = vld [vmem:[%s3702_s12 + $0x30] sm:$0xff]  }
 0x546   : > { %v2956_v51 = vpop.eup %2955  ;;  %2725 = vmatprep.subr.bf16.mxu0 %v3068_v8 }
 0x547   : > { %v883_v52 = vmul.f32 %v2956_v51, %v2948_v29  ;;  %2708 = vmatmul.mubr.msk.bf16.vlgmr.msra.gmra.mrb[16].mxu1 %vm646_vm2, %v886_v50  ;;  %v2922_v50 = vld [vmem:[%s3702_s12 + $0x38] sm:$0xff]   ;;  %v2496_v51 = vld [vmem:[%s3734_s21] ss:$0 sm:$0xff] }
 0x548   : > { %2721 = vmatprep.mubr.msk.bf16.mxu1 %vm3069_vm1, %v3068_v8  ;;  %2718 = vmatpush3.bf16.msra.mxu1 %v2911_v58 }
 0x549   : > { %v887_v53 = vpack.c.bf16 %v883_v52, %v883_v52  ;;  %2719 = vmatprep.subr.bf16.mxu1 %v3068_v8 }
 0x54c   : > { %2714 = vmatmul.mubr.msk.bf16.vlgmr.msra.gmra.mrb[12].mxu0 %vm646_vm2, %v887_v53  ;;  %2720 = vmatpush3.bf16.msra.mxu1 %v2912_v59 }
 0x54d   : > { %2729 = vmatprep.mubr.msk.bf16.mxu0 %vm3069_vm1, %v3068_v8  ;;  %2733 = vmatprep.subr.bf16.mxu1 %v3068_v8 }
 0x5b1   : > { %v931_v54 = vpop.f32.mrb[12].mxu1 }
 0x5b2   : > { %v2697_v55 = vpop.f32.mrb[13].mxu1 }
 0x5b3   : > { %v934_v56 = vpop.f32.mrb[14].mxu1 }
 0x5b4   : > { %v2698_v57 = vpop.f32.mrb[15].mxu1 }
 0x617   : > { %v979_v60 = vpop.f32.mrb[8].mxu0 }
 0x618   : > { %1082 = vrot.lane.b32.xlu0 %v979_v60, %s3716_s27  ;;  %v2703_v61 = vpop.f32.mrb[9].mxu0  ;;  %s3739_s27 = smov 64  }
 0x619   : > { %v982_v62 = vpop.f32.mrb[10].mxu0 }
 0x61a   : > { %v2704_v63 = vpop.f32.mrb[11].mxu0  ;;  %v1027_v1 = vpop.f32.mrb[16].mxu1 }
 0x61b   : > { %1086 = vrot.lane.b32.xlu1 %v1027_v1, %s3715_s25  ;;  %v2709_v2 = vpop.f32.mrb[17].mxu1  ;;  %s3737_s25 = smov 104  }
 0x61c   : > { %v1030_v3 = vpop.f32.mrb[18].mxu1  ;;  %v2509_v2 = vld [vmem:[%s3703_s13] ss:$0 sm:$0xff] }
 0x61d   : > { %v2710_v4 = vpop.f32.mrb[19].mxu1 }
 0x61f   : > { %v1075_v5 = vpop.f32.mrb[12].mxu0 }
 0x620   : > { %1090 = vrot.lane.b32.xlu0 %v1075_v5, %s3714_s20  ;;  %v2715_v6 = vpop.f32.mrb[13].mxu0  ;;  %s3738_s20 = smov 96  }
 0x621   : > { %v1078_v7 = vpop.f32.mrb[14].mxu0 }
 0x622   : > { %v2716_v9 = vpop.f32.mrb[15].mxu0 }
 0x68a   : > { %v1083_v10 = vpop.permute.xlu0 %1082 }
 0x68b   : > { %v1093_v12 = vsel %vm646_vm2, %v931_v54, %v1083_v10 }
 0x68d   : > { %v1087_v11 = vpop.permute.xlu1 %1086 }
 0x68e   : > { %v1095_v13 = vsel %vm1094_vm5, %v1093_v12, %v1087_v11 }
 0x692   : > { %v1091_v14 = vpop.permute.xlu0 %1090 }
 0x693   : > { %v1097_v15 = vsel %vm1096_vm6, %v1095_v13, %v1091_v14 }
 0x694   : > { %v1098_v16 = vpack.c.bf16 %v1097_v15, %v1097_v15  ;;  %v2923_v15 = vld [vmem:[%s3730_s4 + $0x10] sm:$0xff]  }
 0x696   : > { %2722 = vmatmul.mubr.msk.bf16.vlgmr.msra.gmra.mrb[20].mxu1 %vm533_vm0, %v1098_v16  ;;  %v2924_v16 = vld [vmem:[%s3730_s4 + $0x18] sm:$0xff]  }
 0x697   : > { %2749 = vmatprep.mubr.msk.bf16.mxu1 %vm3069_vm1, %v3068_v8  ;;  %2734 = vmatpush3.bf16.msra.mxu1 %v2915_v41 }
 0x698   : > { %2735 = vmatprep.subr.bf16.mxu1 %v3068_v8 }
 0x69b   : > { %2736 = vmatpush3.bf16.msra.mxu1 %v2916_v42 }
 0x69c   : > { %2737 = vmatprep.subr.bf16.mxu1 %v3068_v8 }
 0x69f   : > { %2738 = vmatpush3.bf16.msra.mxu1 %v2917_v44 }
 0x6a0   : > { %2739 = vmatprep.subr.bf16.mxu1 %v3068_v8 }
 0x6a3   : > { %2740 = vmatpush3.bf16.msra.mxu1 %v2918_v46 }
 0x6a4   : > { %2741 = vmatprep.subr.bf16.mxu1 %v3068_v8 }
 0x6a7   : > { %2742 = vmatpush3.bf16.msra.mxu1 %v2919_v47 }
 0x6a8   : > { %2743 = vmatprep.subr.bf16.mxu1 %v3068_v8 }
 0x6ab   : > { %2744 = vmatpush3.bf16.msra.mxu1 %v2920_v48 }
 0x6ac   : > { %2745 = vmatprep.subr.bf16.mxu1 %v3068_v8 }
 0x6af   : > { %2746 = vmatpush3.bf16.msra.mxu1 %v2921_v49 }
 0x6b0   : > { %2747 = vmatprep.subr.bf16.mxu1 %v3068_v8 }
 0x6b3   : > { %2748 = vmatpush3.bf16.msra.mxu1 %v2922_v50 }
 0x6b4   : > { %2779 = vmatprep.subr.bf16.mxu1 %v3068_v8 }
 0x769   : > { %v1152_v17 = vpop.f32.mrb[20].mxu1 }
 0x76a   : > { %v1158_v19 = vadd.f32 %v1152_v17, %v3226_v0  ;;  %v2723_v20 = vpop.f32.mrb[21].mxu1  ;;  %v2913_v0 = vld [vmem:[%s3700_s10] sm:$0xff]  }
 0x76b   : > { %v1155_v21 = vpop.f32.mrb[22].mxu1  ;;  %2726 = vmatpush3.bf16.msra.mxu0 %v2913_v0 }
 0x76c   : > { %v3367_v22 = vadd.f32 %v2493_v18, %v1158_v19  ;;  %v2724_v23 = vpop.f32.mrb[23].mxu1  ;;  %2727 = vmatprep.subr.bf16.mxu0 %v3068_v8  ;;  %v2512_v21 = vld [vmem:[%s3731_s2 + $0x1] ss:$0 sm:$0xff]  ;;  %s2585_s2 = sshll.u32 %s3194_s11, 4 }
 0x76d   : > { %v2513_v23 = vld [vmem:[%s3732_s3 + $0x1] ss:$0 sm:$0xff] }
 0x76e   : > { %v1169_v24 = vsel %vm533_vm0, %v3367_v22, 0.0 }
 0x76f   : > { %1170 = vadd.xlane.f32.xlu1 %v1169_v24  ;;  %2728 = vmatpush3.bf16.msra.mxu0 %v2914_v32 }
 0x770   : > { %2753 = vmatprep.subr.bf16.mxu0 %v3068_v8 }
 0x7fc   : > { %v1171_v25 = vpop.xlane.xlu1 %1170 }
 0x7fd   : > { %v1172_v26 = vmul.f32 0.03125, %v1171_v25 }
 0x7ff   : > { %v1173_v27 = vsub.f32 %v3367_v22, %v1172_v26 }
 0x801   : > { %v1174_v29 = vmul.f32 %v1173_v27, %v1173_v27 }
 0x803   : > { %v1175_v31 = vsel %vm533_vm0, %v1174_v29, 0.0 }
 0x804   : > { %1176 = vadd.xlane.f32.xlu0 %v1175_v31 }
 0x891   : > { %v1177_v34 = vpop.xlane.xlu0 %1176 }
 0x892   : > { %v1178_v35 = vmul.f32 0.03125, %v1177_v34 }
 0x894   : > { %v1179_v36 = vadd.f32 1e-05, %v1178_v35 }
 0x896   : > { %2957 = vrsqrt.f32 %v1179_v36 }
 0x8a0   : > { %v2958_v37 = vpop.eup %2957 }
 0x8a1   : > { %v1181_v30 = vmul.f32 %v2958_v37, %v1173_v27  ;;  %v2519_v27 = vld [vmem:[%s3733_s5 + $0x1] ss:$0 sm:$0xff] }
 0x8a3   : > { %v1188_v33 = vmul.f32 %v2494_v38, %v1181_v30 }
 0x8a5   : > { %v1195_v28 = vadd.f32 %v2495_v39, %v1188_v33 }
 0x8a7   : > { %v1196_v40 = vpack.c.bf16 %v1195_v28, %v1195_v28 }
 0x8a9   : > { %2730 = vmatmul.mubr.msk.bf16.vlgmr.msra.gmra.mrb[16].mxu0 %vm533_vm0, %v1196_v40 }
 0x8aa   : > { %2757 = vmatprep.mubr.msk.bf16.mxu0 %vm3069_vm1, %v3068_v8  ;;  %2754 = vmatpush3.bf16.msra.mxu0 %v2923_v15 }
 0x8ab   : > { %2755 = vmatprep.subr.bf16.mxu0 %v3068_v8 }
 0x8ae   : > { %2756 = vmatpush3.bf16.msra.mxu0 %v2924_v16 }
 0x8af   : > { %2761 = vmatprep.subr.bf16.mxu0 %v3068_v8 }
 0x97c   : > { %v1257_v52 = vpop.f32.mrb[16].mxu0 }
 0x97d   : > { %v1258_v53 = vadd.f32 %v2496_v51, %v1257_v52  ;;  %v2731_v54 = vpop.f32.mrb[17].mxu0 }
 0x97e   : > { %v1260_v55 = vpop.f32.mrb[18].mxu0 }
 0x97f   : > { %v2500_v56 = vmul.f32 -1.702, %v1258_v53  ;;  %v2732_v57 = vpop.f32.mrb[19].mxu0 }
 0x981   : > { %v1265_v58 = vmul.f32 1.442695, %v2500_v56 }
 0x983   : > { %2959 = vpow2.f32 %v1265_v58 }
 0x98d   : > { %v2960_v59 = vpop.eup %2959 }
 0x98e   : > { %v1267_v60 = vadd.f32 1.0, %v2960_v59 }
 0x990   : > { %2961 = vrcp.f32 %v1267_v60 }
 0x99a   : > { %v2962_v61 = vpop.eup %2961 }
 0x99b   : > { %v1270_v62 = vmul.f32 %v2962_v61, %v1258_v53 }
 0x99d   : > { %v1271_v63 = vpack.c.bf16 %v1270_v62, %v1270_v62 }
 0x99f   : > { %2750 = vmatmul.mubr.bf16.vlgmr.msra.gmra.mrb[24].mxu1 %v1271_v63 }
 0x9a0   : > { %2781 = vmatprep.mubr.msk.bf16.mxu1 %vm3069_vm1, %v3068_v8 }
 0xa72   : > { %v1370_v1 = vpop.f32.mrb[24].mxu1 }
 0xa73   : > { %v1376_v3 = vadd.f32 %v1370_v1, %v3367_v22  ;;  %v2751_v4 = vpop.f32.mrb[25].mxu1 }
 0xa74   : > { %v1373_v5 = vpop.f32.mrb[26].mxu1 }
 0xa75   : > { %v3431_v6 = vadd.f32 %v2509_v2, %v1376_v3  ;;  %v2752_v7 = vpop.f32.mrb[27].mxu1 }
 0xa77   : > { %v1389_v9 = vsel %vm533_vm0, %v3431_v6, 0.0 }
 0xa78   : > { %1390 = vadd.xlane.f32.xlu0 %v1389_v9 }
 0xb05   : > { %v1391_v10 = vpop.xlane.xlu0 %1390 }
 0xb06   : > { %v1392_v11 = vmul.f32 0.03125, %v1391_v10 }
 0xb08   : > { %v1393_v12 = vsub.f32 %v3431_v6, %v1392_v11 }
 0xb0a   : > { %v1394_v13 = vmul.f32 %v1393_v12, %v1393_v12 }
 0xb0c   : > { %v1395_v14 = vsel %vm533_vm0, %v1394_v13, 0.0 }
 0xb0d   : > { %1396 = vadd.xlane.f32.xlu1 %v1395_v14 }
 0xb9a   : > { %v1397_v17 = vpop.xlane.xlu1 %1396 }
 0xb9b   : > { %v1398_v18 = vmul.f32 0.03125, %v1397_v17 }
 0xb9d   : > { %v1399_v19 = vadd.f32 1e-05, %v1398_v18 }
 0xb9f   : > { %2963 = vrsqrt.f32 %v1399_v19 }
 0xba9   : > { %v2964_v20 = vpop.eup %2963 }
 0xbaa   : > { %v1401_v22 = vmul.f32 %v2964_v20, %v1393_v12 }
 0xbac   : > { %v1408_v24 = vmul.f32 %v2512_v21, %v1401_v22 }
 0xbae   : > { %v1415_v25 = vadd.f32 %v2513_v23, %v1408_v24 }
 0xbb0   : > { %v1416_v26 = vpack.c.bf16 %v1415_v25, %v1415_v25 }
 0xbb2   : > { %2758 = vmatmul.mubr.msk.bf16.vlgmr.msra.gmra.mrb[20].mxu0 %vm533_vm0, %v1416_v26 }
 0xbb3   : > { %2763 = vmatprep.mubr.msk.bf16.mxu0 %vm3069_vm1, %v3068_v8 }
 0xc85   : > { %v1479_v29 = vpop.f32.mrb[20].mxu0 }
 0xc86   : > { %v1480_v31 = vadd.f32 %v2519_v27, %v1479_v29  ;;  %v2759_v0 = vpop.f32.mrb[21].mxu0 }
 0xc87   : > { %v1482_v32 = vpop.f32.mrb[22].mxu0 }
 0xc88   : > { %1489 = vrot.lane.b32.xlu1 %v1480_v31, %s3735_s26  ;;  %1486 = vrot.lane.b32.xlu0 %v1480_v31, %s3736_s19  ;;  %v2760_v34 = vpop.f32.mrb[23].mxu0  ;;  %v3459_v35 = vpack.c.bf16 %v1480_v31, %v1480_v31  ;;  %s2245_s19 = sld [smem:[#allocation3 + %s3194_s11]]  ;;  %s3648_s26 = scalar_lea.hbm %s3707_s17, %s2585_s2 }
 0xc89   : > { %s3079_s11 = smov [#allocation4]  }
 0xc8c   : > { %1492 = vrot.lane.b32.xlu1 %v1480_v31, %s3737_s25  ;;  %1500 = vrot.lane.b32.xlu0 %v3459_v35, %s3738_s20  ;;  %s3005_s25 = sshll.u32 %s3079_s11, 4  ;;  %s3006_s25 = int_to_ptr.vmem [resolvable:$false] %s3005_s25 }
 0xc8d   : > { %s3007_s4 = scalar_lea.vmem %s3006_s25, 32 }
 0xcfa   : > { %v1490_v36 = vpop.permute.xlu1 %1489  ;;  %v1487_v37 = vpop.permute.xlu0 %1486 }
 0xcfb   : > { %v3464_v38 = vpack.c.bf16 %v1490_v36, %v1490_v36  ;;  %v3466_v30 = vpack.c.bf16 %v1487_v37, %v1487_v37 }
 0xcfd   : > { %1549 = vrot.lane.b32.xlu1 %v3466_v30, %s3738_s20  ;;  %1598 = vrot.lane.b32.xlu0 %v3464_v38, %s3738_s20 }
 0xcfe   : > { %v1493_v39 = vpop.permute.xlu1 %1492  ;;  %v1501_v33 = vpop.permute.xlu0 %1500 }
 0xcff   : > { %v3472_v28 = vpack.c.bf16 %v1493_v39, %v1493_v39  ;;  %v1506_v40 = vsel %vm646_vm2, %v1501_v33, 0 }
 0xd00   : > { %2762 = vmatpush3.bf16.xpose.msra.mxu0 %v1506_v40 }
 0xd01   : > { %1647 = vrot.lane.b32.xlu1 %v3472_v28, %s3738_s20  ;;  %2767 = vmatprep.subr.bf16.mxu0 %v3068_v8  ;;  %s3740_s20 = smov 8  }
 0xd07   : > { %2764 = vmatmul.mubr.msk.bf16.vlgmr.msra.gmra.mrb[24].mxu0 %vm646_vm2, %v3459_v35 }
 0xd08   : > { %2769 = vmatprep.mubr.msk.bf16.mxu0 %vm3069_vm1, %v3068_v8 }
 0xd6f   : > { %v1550_v41 = vpop.permute.xlu1 %1549  ;;  %v1599_v47 = vpop.permute.xlu0 %1598 }
 0xd70   : > { %v1555_v42 = vsel %vm646_vm2, %v1550_v41, 0  ;;  %v1604_v48 = vsel %vm646_vm2, %v1599_v47, 0 }
 0xd71   : > { %2768 = vmatpush3.bf16.xpose.msra.mxu0 %v1555_v42 }
 0xd72   : > { %2773 = vmatprep.subr.bf16.mxu0 %v3068_v8 }
 0xd73   : > { %v1648_v44 = vpop.permute.xlu1 %1647 }
 0xd74   : > { %v1653_v46 = vsel %vm646_vm2, %v1648_v44, 0 }
 0xd75   : > { %2780 = vmatpush3.bf16.xpose.msra.mxu1 %v1653_v46 }
 0xd76   : > { %2791 = vmatprep.subr.bf16.mxu1 %v3068_v8 }
 0xd78   : > { %2770 = vmatmul.mubr.msk.bf16.vlgmr.msra.gmra.mrb[28].mxu0 %vm646_vm2, %v3466_v30 }
 0xd79   : > { %2774 = vmatpush3.bf16.xpose.msra.mxu0 %v1604_v48  ;;  %2775 = vmatprep.mubr.msk.bf16.mxu0 %vm3069_vm1, %v3068_v8 }
 0xd7a   : > { %2785 = vmatprep.subr.bf16.mxu0 %v3068_v8 }
 0xd7c   : > { %2782 = vmatmul.mubr.msk.bf16.vlgmr.msra.gmra.mrb[28].mxu1 %vm646_vm2, %v3472_v28 }
 0xd7d   : > { %2793 = vmatprep.mubr.msk.bf16.mxu1 %vm3069_vm1, %v3068_v8 }
 0xd80   : > { %2776 = vmatmul.mubr.msk.bf16.vlgmr.msra.gmra.mrb[32].mxu0 %vm646_vm2, %v3464_v38 }
 0xd81   : > { %2787 = vmatprep.mubr.msk.bf16.mxu0 %vm3069_vm1, %v3068_v8 }
 0xdda   : > { %v1542_v49 = vpop.f32.mrb[24].mxu0 }
 0xddb   : > { %v1543_v50 = vadd.f32 %v1542_v49, %v3304_v45  ;;  %v2765_v51 = vpop.f32.mrb[25].mxu0 }
 0xddc   : > { %v1545_v52 = vpop.f32.mrb[26].mxu0 }
 0xddd   : > { %v2766_v53 = vpop.f32.mrb[27].mxu0  ;;  %v1695_v54 = vsel %vm646_vm2, %v1543_v50, -inf }
 0xdde   : > { %1696 = vmax.xlane.f32.xlu0 %v1695_v54 }
 0xe4b   : > { %v1591_v55 = vpop.f32.mrb[28].mxu0 }
 0xe4c   : > { %v1592_v56 = vadd.f32 %v1591_v55, %v3304_v45  ;;  %v2771_v57 = vpop.f32.mrb[29].mxu0 }
 0xe4d   : > { %v1594_v58 = vpop.f32.mrb[30].mxu0 }
 0xe4e   : > { %v2772_v59 = vpop.f32.mrb[31].mxu0  ;;  %v1698_v60 = vsel %vm646_vm2, %v1592_v56, -inf }
 0xe4f   : > { %1699 = vmax.xlane.f32.xlu1 %v1698_v60  ;;  %v1689_v61 = vpop.f32.mrb[28].mxu1  ;;  %v2925_v60 = vld [vmem:[%s3696_s6 + $0x10] sm:$0xff]  }
 0xe50   : > { %v2783_v62 = vpop.f32.mrb[29].mxu1  ;;  %v1690_v7 = vadd.f32 %v1689_v61, %v3304_v45  ;;  %v2926_v61 = vld [vmem:[%s3696_s6 + $0x18] sm:$0xff]  }
 0xe51   : > { %v1692_v63 = vpop.f32.mrb[30].mxu1 }
 0xe52   : > { %v2784_v1 = vpop.f32.mrb[31].mxu1  ;;  %v1704_v11 = vsel %vm646_vm2, %v1690_v7, -inf }
 0xe53   : > { %v1640_v2 = vpop.f32.mrb[32].mxu0 }
 0xe54   : > { %v1641_v3 = vadd.f32 %v1640_v2, %v3304_v45  ;;  %v2777_v4 = vpop.f32.mrb[33].mxu0 }
 0xe55   : > { %v1643_v5 = vpop.f32.mrb[34].mxu0 }
 0xe56   : > { %v2778_v9 = vpop.f32.mrb[35].mxu0  ;;  %v1701_v10 = vsel %vm646_vm2, %v1641_v3, -inf }
 0xe57   : > { %1702 = vmax.xlane.f32.xlu0 %v1701_v10 }
 0xe5b   : > { %1705 = vmax.xlane.f32.xlu0 %v1704_v11 }
 0xe60   : > { %1743 = vrot.lane.b32.xlu1 %v3459_v35, %s3739_s27 }
 0xe6b   : > { %v1697_v12 = vpop.xlane.xlu0 %1696 }
 0xe6c   : > { %v1707_v13 = vsub.f32 %v1543_v50, %v1697_v12 }
 0xe6e   : > { %v1711_v14 = vmul.f32 1.442695, %v1707_v13 }
 0xe70   : > { %2965 = vpow2.f32 %v1711_v14 }
 0xe7a   : > { %v2966_v15 = vpop.eup %2965 }
 0xe7b   : > { %v1719_v16 = vsel %vm646_vm2, %v2966_v15, 0.0 }
 0xe84   : > { %1720 = vadd.xlane.f32.xlu1 %v1719_v16 }
 0xe95   : > { %1839 = vrot.lane.b32.xlu1 %v3464_v38, %s3739_s27 }
 0xedc   : > { %v1700_v45 = vpop.xlane.xlu1 %1699 }
 0xedd   : > { %v1708_v17 = vsub.f32 %v1592_v56, %v1700_v45 }
 0xedf   : > { %v1713_v18 = vmul.f32 1.442695, %v1708_v17 }
 0xee0   : > { %v1744_v19 = vpop.permute.xlu1 %1743 }
 0xee1   : > { %2967 = vpow2.f32 %v1713_v18  ;;  %v1749_v20 = vsel %vm893_vm4, %v1744_v19, 0 }
 0xee2   : > { %2786 = vmatpush3.bf16.msra.mxu0 %v1749_v20  ;;  %v2539_v20 = vld [vmem:[%s3697_s7 + $0x1] ss:$0 sm:$0xff] }
 0xee3   : > { %2797 = vmatprep.subr.bf16.mxu0 %v3068_v8 }
 0xee4   : > { %v1703_v21 = vpop.xlane.xlu0 %1702 }
 0xee5   : > { %v1709_v22 = vsub.f32 %v1641_v3, %v1703_v21 }
 0xee7   : > { %v1715_v23 = vmul.f32 1.442695, %v1709_v22 }
 0xee8   : > { %v1706_v24 = vpop.xlane.xlu0 %1705 }
 0xee9   : > { %2969 = vpow2.f32 %v1715_v23  ;;  %v1710_v25 = vsub.f32 %v1690_v7, %v1706_v24 }
 0xeeb   : > { %v2968_v26 = vpop.eup %2967  ;;  %v1717_v27 = vmul.f32 1.442695, %v1710_v25 }
 0xeec   : > { %v1722_v29 = vsel %vm646_vm2, %v2968_v26, 0.0 }
 0xeed   : > { %2971 = vpow2.f32 %v1717_v27  ;;  %1723 = vadd.xlane.f32.xlu0 %v1722_v29 }
 0xef3   : > { %v2970_v31 = vpop.eup %2969 }
 0xef4   : > { %v1725_v0 = vsel %vm646_vm2, %v2970_v31, 0.0 }
 0xef5   : > { %1726 = vadd.xlane.f32.xlu1 %v1725_v0 }
 0xef7   : > { %v2972_v32 = vpop.eup %2971 }
 0xef8   : > { %v1728_v34 = vsel %vm646_vm2, %v2972_v32, 0.0 }
 0xef9   : > { %1729 = vadd.xlane.f32.xlu0 %v1728_v34  ;;  %v2928_v34 = vld [vmem:[%s3700_s10 + $0x18] sm:$0xff]  }
 0xf06   : > { %1887 = vrot.lane.b32.xlu1 %v3472_v28, %s3739_s27 }
 0xf0f   : > { %1791 = vrot.lane.b32.xlu0 %v3466_v30, %s3739_s27  ;;  %s3741_s27 = smov 16  }
 0xf11   : > { %v1721_v35 = vpop.xlane.xlu1 %1720 }
 0xf12   : > { %2973 = vrcp.f32 %v1721_v35 }
 0xf15   : > { %v1840_v38 = vpop.permute.xlu1 %1839 }
 0xf16   : > { %v1845_v33 = vsel %vm893_vm4, %v1840_v38, 0 }
 0xf1c   : > { %v2974_v36 = vpop.eup %2973 }
 0xf1d   : > { %v1732_v37 = vmul.f32 %v2974_v36, %v2966_v15 }
 0xf1f   : > { %v1739_v39 = vpack.c.bf16 %v1732_v37, %v1732_v37 }
 0xf21   : > { %2788 = vmatmul.mubr.msk.bf16.vlgmr.msra.gmra.mrb[36].mxu0 %vm646_vm2, %v1739_v39  ;;  %v2542_v39 = vld [vmem:[%s3698_s8 + $0x1] ss:$0 sm:$0xff] }
 0xf22   : > { %2798 = vmatpush3.bf16.msra.mxu0 %v1845_v33  ;;  %2799 = vmatprep.mubr.msk.bf16.mxu0 %vm3069_vm1, %v3068_v8 }
 0xf23   : > { %2809 = vmatprep.subr.bf16.mxu0 %v3068_v8 }
 0xf7a   : > { %v1724_v28 = vpop.xlane.xlu0 %1723 }
 0xf7b   : > { %2975 = vrcp.f32 %v1724_v28  ;;  %v2543_v28 = vld [vmem:[%s3699_s9 + $0x1] ss:$0 sm:$0xff] }
 0xf82   : > { %v1727_v40 = vpop.xlane.xlu1 %1726 }
 0xf83   : > { %2977 = vrcp.f32 %v1727_v40 }
 0xf85   : > { %v2976_v30 = vpop.eup %2975 }
 0xf86   : > { %v1730_v41 = vpop.xlane.xlu0 %1729  ;;  %v1734_v42 = vmul.f32 %v2976_v30, %v2968_v26  ;;  %v1888_v47 = vpop.permute.xlu1 %1887 }
 0xf87   : > { %2979 = vrcp.f32 %v1730_v41  ;;  %v1893_v51 = vsel %vm893_vm4, %v1888_v47, 0  ;;  %v2932_v47 = vld [vmem:[%s3702_s12 + $0x58] sm:$0xff]  }
 0xf88   : > { %v1740_v49 = vpack.c.bf16 %v1734_v42, %v1734_v42  ;;  %v2929_v42 = vld [vmem:[%s3702_s12 + $0x40] sm:$0xff]  }
 0xf8a   : > { %v1792_v44 = vpop.permute.xlu0 %1791 }
 0xf8b   : > { %v1797_v46 = vsel %vm893_vm4, %v1792_v44, 0  ;;  %v2930_v44 = vld [vmem:[%s3702_s12 + $0x48] sm:$0xff]  }
 0xf8c   : > { %2792 = vmatpush3.bf16.msra.mxu1 %v1797_v46  ;;  %v2931_v46 = vld [vmem:[%s3702_s12 + $0x50] sm:$0xff]  }
 0xf8d   : > { %v2978_v48 = vpop.eup %2977  ;;  %2803 = vmatprep.subr.bf16.mxu1 %v3068_v8 }
 0xf8e   : > { %v1736_v50 = vmul.f32 %v2978_v48, %v2970_v31  ;;  %v2933_v48 = vld [vmem:[%s3702_s12 + $0x60] sm:$0xff]  }
 0xf8f   : > { %2794 = vmatmul.mubr.msk.bf16.vlgmr.msra.gmra.mrb[32].mxu1 %vm646_vm2, %v1740_v49  ;;  %v2934_v49 = vld [vmem:[%s3702_s12 + $0x68] sm:$0xff]  }
 0xf90   : > { %2804 = vmatpush3.bf16.msra.mxu1 %v1893_v51  ;;  %v1741_v52 = vpack.c.bf16 %v1736_v50, %v1736_v50  ;;  %2805 = vmatprep.mubr.msk.bf16.mxu1 %vm3069_vm1, %v3068_v8  ;;  %v2935_v50 = vld [vmem:[%s3702_s12 + $0x70] sm:$0xff]   ;;  %v2936_v51 = vld [vmem:[%s3702_s12 + $0x78] sm:$0xff]  }
 0xf91   : > { %v2980_v53 = vpop.eup %2979  ;;  %2817 = vmatprep.subr.bf16.mxu1 %v3068_v8 }
 0xf92   : > { %v1738_v54 = vmul.f32 %v2980_v53, %v2972_v32  ;;  %2800 = vmatmul.mubr.msk.bf16.vlgmr.msra.gmra.mrb[40].mxu0 %vm646_vm2, %v1741_v52  ;;  %v2549_v52 = vld [vmem:[%s3734_s21 + $0x1] ss:$0 sm:$0xff] }
 0xf93   : > { %2813 = vmatprep.mubr.msk.bf16.mxu0 %vm3069_vm1, %v3068_v8  ;;  %2810 = vmatpush3.bf16.msra.mxu0 %v2925_v60 }
 0xf94   : > { %v1742_v55 = vpack.c.bf16 %v1738_v54, %v1738_v54  ;;  %2811 = vmatprep.subr.bf16.mxu0 %v3068_v8 }
 0xf97   : > { %2806 = vmatmul.mubr.msk.bf16.vlgmr.msra.gmra.mrb[36].mxu1 %vm646_vm2, %v1742_v55  ;;  %2812 = vmatpush3.bf16.msra.mxu0 %v2926_v61 }
 0xf98   : > { %2821 = vmatprep.mubr.msk.bf16.mxu1 %vm3069_vm1, %v3068_v8  ;;  %2825 = vmatprep.subr.bf16.mxu0 %v3068_v8 }
 0xff4   : > { %v1785_v56 = vpop.f32.mrb[36].mxu0 }
 0xff5   : > { %v2789_v57 = vpop.f32.mrb[37].mxu0 }
 0xff6   : > { %v1788_v58 = vpop.f32.mrb[38].mxu0 }
 0xff7   : > { %v2790_v59 = vpop.f32.mrb[39].mxu0 }
0x1062   : > { %v1833_v62 = vpop.f32.mrb[32].mxu1 }
0x1063   : > { %1936 = vrot.lane.b32.xlu0 %v1833_v62, %s3740_s20  ;;  %v2795_v63 = vpop.f32.mrb[33].mxu1  ;;  %s517_s20 = sand.u32 1, %s3057_s0  }
0x1064   : > { %v1836_v1 = vpop.f32.mrb[34].mxu1 }
0x1065   : > { %v2796_v2 = vpop.f32.mrb[35].mxu1  ;;  %v1881_v3 = vpop.f32.mrb[40].mxu0 }
0x1066   : > { %1940 = vrot.lane.b32.xlu1 %v1881_v3, %s3741_s27  ;;  %v2801_v4 = vpop.f32.mrb[41].mxu0  ;;  %v2246_v2 = vstv %s2245_s19  ;;  %s518_s27 = scalar_lea.vmem [#allocation4], %s517_s20  ;;  %s2404_s19 = scalar_lea.sflag [#allocation5], %s517_s20 }
0x1067   : > { %v1884_v5 = vpop.f32.mrb[42].mxu0  ;;  %v2579_v4 = vld [vmem:[%s3703_s13 + $0x1] ss:$0 sm:$0xff]  ;;  %vm2247_vm7 = vcmp.eq.s32.totalorder %v3301_v43, %v2246_v2 }
0x1068   : > { %v2802_v7 = vpop.f32.mrb[43].mxu0 }
0x106a   : > { %v1929_v9 = vpop.f32.mrb[36].mxu1 }
0x106b   : > { %1944 = vrot.lane.b32.xlu0 %v1929_v9, %s3742_s28  ;;  %v2807_v10 = vpop.f32.mrb[37].mxu1  ;;  %s2416_s28 = sshll.u32 %s518_s27, 4  ;;  %s3650_s28 = int_to_ptr.vmem [resolvable:$true] %s2416_s28 }
0x106c   : > { %v1932_v11 = vpop.f32.mrb[38].mxu1  ;;  %s3001_s3 = scalar_lea.vmem %s3650_s28, 16  ;;  %p3008_p5 = scmp.lt.s32.totalorder %s3650_s28, %s3006_s25 }
0x106d   : > { %v2808_v12 = vpop.f32.mrb[39].mxu1  ;;  %p3002_p2 = scmp.ne.s32.totalorder %s3650_s28, %s3001_s3  ;;  %p3009_p6 = scmp.lt.s32.totalorder %s3007_s4, %s3001_s3 }
0x106e   : > { %v2580_v12 = vsel %vm2247_vm7, 1.0, %v3068_v8 }
0x106f   : > { %p3003_p3 = pnand %p3002_p2, %p3211_p10  ;;  %p3010_p7 = por %p3009_p6, %p3008_p5 }
0x1071   : > { %p3004_p4 = pneg %p3003_p3 }
0x1073   : > { %p3011_p8 = pnand %p3010_p7, %p3004_p4 }
0x10d5   : > { %v1937_v13 = vpop.permute.xlu0 %1936 }
0x10d6   : > { %v1947_v15 = vsel %vm646_vm2, %v1785_v56, %v1937_v13 }
0x10d8   : > { %v1941_v14 = vpop.permute.xlu1 %1940 }
0x10d9   : > { %v1948_v16 = vsel %vm1094_vm5, %v1947_v15, %v1941_v14 }
0x10dd   : > { %v1945_v45 = vpop.permute.xlu0 %1944 }
0x10de   : > { %v1949_v17 = vsel %vm1096_vm6, %v1948_v16, %v1945_v45 }
0x10df   : > { %v1950_v18 = vpack.c.bf16 %v1949_v17, %v1949_v17 }
0x10e1   : > { %2814 = vmatmul.mubr.msk.bf16.vlgmr.msra.gmra.mrb[44].mxu0 %vm533_vm0, %v1950_v18 }
0x10e2   : > { %2841 = vmatprep.mubr.msk.bf16.mxu0 %vm3069_vm1, %v3068_v8  ;;  %2826 = vmatpush3.bf16.msra.mxu0 %v2929_v42 }
0x10e3   : > { %2827 = vmatprep.subr.bf16.mxu0 %v3068_v8 }
0x10e6   : > { %2828 = vmatpush3.bf16.msra.mxu0 %v2930_v44 }
0x10e7   : > { %2829 = vmatprep.subr.bf16.mxu0 %v3068_v8 }
0x10ea   : > { %2830 = vmatpush3.bf16.msra.mxu0 %v2931_v46 }
0x10eb   : > { %2831 = vmatprep.subr.bf16.mxu0 %v3068_v8 }
0x10ee   : > { %2832 = vmatpush3.bf16.msra.mxu0 %v2932_v47 }
0x10ef   : > { %2833 = vmatprep.subr.bf16.mxu0 %v3068_v8 }
0x10f2   : > { %2834 = vmatpush3.bf16.msra.mxu0 %v2933_v48 }
0x10f3   : > { %2835 = vmatprep.subr.bf16.mxu0 %v3068_v8 }
0x10f6   : > { %2836 = vmatpush3.bf16.msra.mxu0 %v2934_v49 }
0x10f7   : > { %2837 = vmatprep.subr.bf16.mxu0 %v3068_v8 }
0x10fa   : > { %2838 = vmatpush3.bf16.msra.mxu0 %v2935_v50 }
0x10fb   : > { %2839 = vmatprep.subr.bf16.mxu0 %v3068_v8 }
0x10fe   : > { %2840 = vmatpush3.bf16.msra.mxu0 %v2936_v51 }
0x11b4   : > { %v2005_v19 = vpop.f32.mrb[44].mxu0 }
0x11b5   : > { %v2011_v21 = vadd.f32 %v2005_v19, %v3431_v6  ;;  %v2815_v22 = vpop.f32.mrb[45].mxu0  ;;  %v2927_v6 = vld [vmem:[%s3700_s10 + $0x10] sm:$0xff]   ;;  %v2937_v19 = vld [vmem:[%s3706_s16] sm:$0xff]  }
0x11b6   : > { %v2008_v23 = vpop.f32.mrb[46].mxu0  ;;  %2818 = vmatpush3.bf16.msra.mxu1 %v2927_v6 }
0x11b7   : > { %v3561_v24 = vadd.f32 %v2539_v20, %v2011_v21  ;;  %v2816_v25 = vpop.f32.mrb[47].mxu0  ;;  %2819 = vmatprep.subr.bf16.mxu1 %v3068_v8  ;;  %v2938_v20 = vld [vmem:[%s3706_s16 + $0x8] sm:$0xff]  }
0x11b8   : > { %v2323_v25 = vld [vmem:[%s3704_s14] sm:$0x1] }
0x11b9   : > { %v2025_v26 = vsel %vm533_vm0, %v3561_v24, 0.0 }
0x11ba   : > { %2026 = vadd.xlane.f32.xlu1 %v2025_v26  ;;  %2820 = vmatpush3.bf16.msra.mxu1 %v2928_v34 }
0x11bb   : > { %2845 = vmatprep.subr.mxu1 %v3068_v8 }
0x1247   : > { %v2027_v27 = vpop.xlane.xlu1 %2026 }
0x1248   : > { %v2028_v29 = vmul.f32 0.03125, %v2027_v27  ;;  %v2324_v27 = vld [vmem:[%s3705_s15] sm:$0x1] }
0x124a   : > { %v2029_v31 = vsub.f32 %v3561_v24, %v2028_v29 }
0x124c   : > { %v2030_v0 = vmul.f32 %v2029_v31, %v2029_v31 }
0x124e   : > { %v2031_v32 = vsel %vm533_vm0, %v2030_v0, 0.0 }
0x124f   : > { %2032 = vadd.xlane.f32.xlu0 %v2031_v32 }
0x12dc   : > { %v2033_v35 = vpop.xlane.xlu0 %2032 }
0x12dd   : > { %v2034_v36 = vmul.f32 0.03125, %v2033_v35 }
0x12df   : > { %v2035_v37 = vadd.f32 1e-05, %v2034_v36 }
0x12e1   : > { %2981 = vrsqrt.f32 %v2035_v37 }
0x12eb   : > { %v2982_v38 = vpop.eup %2981 }
0x12ec   : > { %v2037_v33 = vmul.f32 %v2982_v38, %v2029_v31 }
0x12ee   : > { %v2044_v40 = vmul.f32 %v2542_v39, %v2037_v33 }
0x12f0   : > { %v2051_v30 = vadd.f32 %v2543_v28, %v2044_v40 }
0x12f2   : > { %v2052_v41 = vpack.c.bf16 %v2051_v30, %v2051_v30 }
0x12f4   : > { %2822 = vmatmul.mubr.msk.bf16.vlgmr.msra.gmra.mrb[40].mxu1 %vm533_vm0, %v2052_v41 }
0x12f5   : > { %2847 = vmatprep.mubr.msk.f32.mxu1 %vm3069_vm1, %v3068_v8 }
0x13c7   : > { %v2115_v53 = vpop.f32.mrb[40].mxu1 }
0x13c8   : > { %v2116_v54 = vadd.f32 %v2549_v52, %v2115_v53  ;;  %v2823_v55 = vpop.f32.mrb[41].mxu1 }
0x13c9   : > { %v2118_v56 = vpop.f32.mrb[42].mxu1 }
0x13ca   : > { %v2553_v57 = vmul.f32 -1.702, %v2116_v54  ;;  %v2824_v58 = vpop.f32.mrb[43].mxu1 }
0x13cc   : > { %v2123_v59 = vmul.f32 1.442695, %v2553_v57 }
0x13ce   : > { %2983 = vpow2.f32 %v2123_v59 }
0x13d8   : > { %v2984_v60 = vpop.eup %2983 }
0x13d9   : > { %v2125_v61 = vadd.f32 1.0, %v2984_v60 }
0x13db   : > { %2985 = vrcp.f32 %v2125_v61 }
0x13e5   : > { %v2986_v62 = vpop.eup %2985 }
0x13e6   : > { %v2128_v63 = vmul.f32 %v2986_v62, %v2116_v54 }
0x13e8   : > { %v2129_v1 = vpack.c.bf16 %v2128_v63, %v2128_v63 }
0x13ea   : > { %2842 = vmatmul.mubr.bf16.vlgmr.msra.gmra.mrb[48].mxu0 %v2129_v1 }
0x14bd   : > { %v2229_v3 = vpop.f32.mrb[48].mxu0 }
0x14be   : > { %v2235_v5 = vadd.f32 %v2229_v3, %v3561_v24  ;;  %v2843_v7 = vpop.f32.mrb[49].mxu0 }
0x14bf   : > { %v2232_v9 = vpop.f32.mrb[50].mxu0 }
0x14c0   : > { %v2244_v10 = vadd.f32 %v2579_v4, %v2235_v5  ;;  %v2844_v11 = vpop.f32.mrb[51].mxu0 }
0x14c2   : > { %2846 = vmatpush3.msra.mxu1 %v2244_v10 }
0x14c3   : > { %2848 = vmatmul.mubr.msk.f32.vlgmr.msra.gmra.mrb[44].mxu1 %vm646_vm2, %v2580_v12  ;;  %2850 = vmatprep.subr.bf16.mxu1 %v3068_v8 }
0x14c4   : > { %2854 = vmatprep.mubr.msk.bf16.mxu1 %vm3069_vm1, %v3068_v8  ;;  %2851 = vmatpush3.bf16.msra.mxu1 %v2937_v19 }
0x14c5   : > { %2852 = vmatprep.subr.bf16.mxu1 %v3068_v8 }
0x14c8   : > { %2853 = vmatpush3.bf16.msra.mxu1 %v2938_v20 }
0x1596   : > { %v2319_v13 = vpop.f32.mrb[44].mxu1 }
0x1597   : > { %v2326_v14 = vsel %vm2325_vm8, %v2319_v13, 0.0  ;;  %v2849_v43 = vpop.f32.mrb[45].mxu1 }
0x1598   : > { %2327 = vadd.xlane.f32.xlu0 %v2326_v14 }
0x1625   : > { %v2328_v15 = vpop.xlane.xlu0 %2327 }
0x1626   : > { %v2329_v16 = vmul.f32 0.03125, %v2328_v15 }
0x1628   : > { %v2330_v45 = vsub.f32 %v2319_v13, %v2329_v16 }
0x162a   : > { %v2331_v17 = vmul.f32 %v2330_v45, %v2330_v45 }
0x162c   : > { %v2332_v18 = vsel %vm2325_vm8, %v2331_v17, 0.0 }
0x162d   : > { %2333 = vadd.xlane.f32.xlu1 %v2332_v18 }
0x16ba   : > { %v2334_v21 = vpop.xlane.xlu1 %2333 }
0x16bb   : > { %v2335_v22 = vmul.f32 0.03125, %v2334_v21 }
0x16bd   : > { %v2336_v23 = vadd.f32 1e-05, %v2335_v22 }
0x16bf   : > { %2987 = vrsqrt.f32 %v2336_v23 }
0x16c9   : > { %v2988_v24 = vpop.eup %2987 }
0x16ca   : > { %v2338_v26 = vmul.f32 %v2988_v24, %v2330_v45 }
0x16cc   : > { %v2339_v29 = vmul.f32 %v2338_v26, %v2323_v25 }
0x16ce   : > { %v2340_v31 = vadd.f32 %v2339_v29, %v2324_v27 }
0x16d0   : > { %v2341_v0 = vpack.c.bf16 %v2340_v31, %v2340_v31 }
0x16d2   : > { %2855 = vmatmul.mubr.msk.bf16.vlgmr.msra.gmra.mrb[48].mxu1 %vm533_vm0, %v2341_v0 }
0x17a5   : > { %v2395_v8 = vpop.f32.mrb[48].mxu1 }
0x17a6   : > { %2402 = vst.msk [vmem:[%s518_s27] sm:$0x1] %vm2401_vm9, %v2395_v8  ;;  %v2856_v32 = vpop.f32.mrb[49].mxu1 }
0x17a7   : > { %v2398_v6 = vpop.f32.mrb[50].mxu1 }
0x17a8   : > { %3014 = shalt.err (!%p3011_p8)
}
0x17a9   : > { %s3015_s5 = scalar_lea.hbm %s3648_s26, 16  ;;  %s3019_s27 = scalar_lea.hbm %s3707_s17, 32 }
0x17aa   : > { %p3016_p9 = scmp.ne.s32.totalorder %s3648_s26, %s3015_s5  ;;  %p3020_p0 = scmp.lt.u32.totalorder %s3648_s26, %s3707_s17 }
0x17ab   : > { %p3021_p1 = scmp.lt.u32.totalorder %s3019_s27, %s3015_s5  ;;  %p3023_p3 = scmp.lt.u32.totalorder %s3015_s5, %s3648_s26 }
0x17ac   : > { %p3017_p12 = pnand %p3016_p9, %p3211_p10 }
0x17ad   : > { %p3022_p2 = por %p3021_p1, %p3020_p0 }
0x17ae   : > { %p3018_p13 = pneg %p3017_p12 }
0x17af   : > { %p3024_p4 = por %p3023_p3, %p3022_p2 }
0x17b1   : > { %p3025_p5 = pnand %p3024_p4, %p3018_p13 }
0x17b3   : > { %3028 = shalt.err (!%p3025_p5)
}
0x17b4   : > { %2858 = dma.vmem_to_hbm [thread:$0]  (%p3211_p10), %s3650_s28, 16, %s3648_s26, %s2404_s19   ;;  %v2857_v34 = vpop.f32.mrb[51].mxu1 }
0x17b5 PF: > { %p2864_p6 = scmp.ge.s32.totalorder %s3065_s18, 2  ;;  %s2428_s3 = sand.u32 1, %s3053_s29  }
0x17b6   : > { %s2429_s4 = scalar_lea.sflag [#allocation5], %s2428_s3 }
0x17b7   : > { %p2861_p7 = pnand %p2864_p6, %p3215_p11 }
0x17b9   : > { %3048 = dma.done.wait (!%p2861_p7), %s2429_s4, 16  }
0x17ba   : > { %3050 = vsyncadd (!%p2861_p7), %s2429_s4, 4294967280  ;;  %p33_p8 = scmp.ge.s32.totalorder %s3198_s1, 4   ;;  %s3743_s29 = smov %s3057_s0 }
0x17bb   : > { %s3744_s0 = smov %s3061_s30  ;;  %s3745_s30 = smov %s3209_s22 }
0x17bc   : > { %s3746_s18 = smov %s3198_s1  ;;  %35 = sbr.rel (!%p33_p8) target bundleno = 25 (0x19), region = 131 }
0x17c3   :  { %2433 = vsyncpa [#allocation5], 1 }
0x17c4   :  { %2435 = vsyncpa [#allocation5 + $0x1], 1 }

</bundles_post_ra>
